<compile_context>
chip_gen: v7x
topology: tpu7x:2x2x1
jax: 0.10.0
libtpu: 0.0.40
codegen_flags: <defaults>
</compile_context>

<pallas_src>
import jax
import jax.numpy as jnp
import numpy as np
from jax import lax
from jax.experimental import pallas as pl
from jax.experimental.pallas import tpu as pltpu

BN_EPS = 1e-5   # BatchNorm1d eps (eval mode)
LANE = 128      # TPU lane width  (feature-dim padding target)
SUB = 8         # TPU sublane width
ROW_TINY = 16   # row padding for toy graphs (bf16 sublane pack = 16)


def _rup(n, m):
    return ((n + m - 1) // m) * m


def _row_pad(n):
    # Lane-dense (128) padding of the graph-operator dims for non-toy graphs;
    # keep small padding only when 128 would dominate.
    return _rup(n, LANE) if n >= 64 else _rup(n, ROW_TINY)


def _pad2(a, rows, cols):
    a = jnp.asarray(a, jnp.float32)
    out = jnp.zeros((rows, cols), jnp.float32)
    return out.at[: a.shape[0], : a.shape[1]].set(a)


def _vmem_limit_bytes():
    # Per-generation budget: v4/v5e/v6e have 128 MiB physical VMEM (raise past the
    # 16/32 MiB scoped defaults); v7x has only 64 MiB -> leave double-buffer headroom.
    try:
        kind = jax.devices()[0].device_kind.lower()
    except Exception:
        kind = ""
    if any(t in kind for t in ("v4", "v5", "v6")):
        return 96 * 1024 * 1024
    return 48 * 1024 * 1024


# ----------------------------------------------------------------------------
# Fused Pallas kernel: 3x GINEConv + fused mean readout + MLP head
# ----------------------------------------------------------------------------
def _gine_fused_kernel(*refs):
    o_ref = refs[-1]
    src_ref, dst_ref, bat_ref, invc_ref, x_ref, ea_ref = refs[:6]
    conv_refs = refs[6:24]                     # 3 layers x (we, be, w1, b1, w2, b2)
    wl1_refs = refs[24:27]                     # lin1 split per pooled branch
    bl1_ref, wl2_ref, bl2_ref = refs[27:30]

    f32 = jnp.float32
    bf16 = jnp.bfloat16
    E = src_ref.shape[0]
    N = x_ref.shape[0]
    B = o_ref.shape[0]

    # Graph operators as bf16 one-hots, built once from O(E)+O(N) int32 index vectors
    # and reused by all 3 layers. Padded edges/nodes carry index == N/B so they match
    # nothing -> all-zero rows/columns (mathematically inert).
    src = src_ref[...]                                                   # [E, 1]
    dst = dst_ref[...]                                                   # [1, E]
    bat = bat_ref[...]                                                   # [1, N]
    G = jnp.where(src == lax.broadcasted_iota(jnp.int32, (E, N), 1),
                  1.0, 0.0).astype(bf16)                                 # gather      [E, N]
    S = jnp.where(dst == lax.broadcasted_iota(jnp.int32, (N, E), 0),
                  1.0, 0.0).astype(bf16)                                 # scatter-add [N, E]
    Pm = jnp.where(bat == lax.broadcasted_iota(jnp.int32, (B, N), 0),
                   1.0, 0.0).astype(bf16)                                # membership  [B, N]
    inv_cnt = invc_ref[...]                                              # [B, 1] host-computed 1/|graph|

    x = x_ref[...]
    ea = ea_ref[...]

    def gine_conv(h, we, be, w1, b1, w2, b2):
        e = jnp.dot(ea, we, preferred_element_type=f32) + be             # lin_edge: edge_dim -> in_ch
        x_j = jnp.dot(G, h.astype(bf16), preferred_element_type=f32)     # gather x[src] (bf16 MXU, f32 acc)
        msg = jnp.maximum(x_j + e, 0.0)                                  # GINE message
        agg = jnp.dot(S, msg.astype(bf16), preferred_element_type=f32)   # scatter-add at dst
        z = agg + h                                                      # + (1 + eps) * x_i, eps = 0
        # nn: Linear -> BatchNorm1d(eval, folded per-channel into w1/b1) -> ReLU -> Linear -> ReLU
        t = jnp.maximum(jnp.dot(z, w1, preferred_element_type=f32) + b1, 0.0)
        return jnp.maximum(jnp.dot(t, w2, preferred_element_type=f32) + b2, 0.0)

    # 3 convs with readout ('mean') fused inside the layer loop: only the pooled
    # [B, hid] branch (and its lin1 contribution) stays live across layers.
    h = x
    acc = None
    for l in range(3):
        we, be, w1, b1, w2, b2 = (r[...] for r in conv_refs[6 * l: 6 * l + 6])
        h = gine_conv(h, we, be, w1, b1, w2, b2)
        p = jnp.dot(Pm, h.astype(bf16), preferred_element_type=f32) * inv_cnt   # mean pool [B, hid]
        c = jnp.dot(p, wl1_refs[l][...], preferred_element_type=f32)            # lin1 per-branch (== concat @ W)
        acc = c if acc is None else acc + c

    f = jnp.maximum(acc + bl1_ref[...], 0.0)                             # ReLU; dropout = identity (eval)
    y = jnp.dot(f, wl2_ref[...], preferred_element_type=f32) + bl2_ref[...]
    o_ref[...] = pl.reciprocal(1.0 + jnp.exp(-y), approx=True)           # sigmoid (EUP vrcp slot)


# ----------------------------------------------------------------------------
# Wrapper
# ----------------------------------------------------------------------------
def gine_model_forward(x, edge_index, edge_attr, batch, pparams, num_graphs):
    n = x.shape[0]
    e = edge_attr.shape[0]
    n_pad = _row_pad(n)
    e_pad = _row_pad(e)
    b_pad = _rup(num_graphs, SUB)
    din_pad = pparams["convs"][0]["w1"].shape[0]
    de_pad = pparams["convs"][0]["we"].shape[0]
    out_pad = pparams["lin2_w"].shape[1]

    x_p = _pad2(x, n_pad, din_pad)
    ea_p = _pad2(edge_attr, e_pad, de_pad)
    batch = batch.astype(jnp.int32)
    # Padded (invalid) edges/nodes get index == n_pad / b_pad, which matches nothing in-kernel.
    src = jnp.full((e_pad, 1), n_pad, jnp.int32).at[:e, 0].set(edge_index[0].astype(jnp.int32))
    dst = jnp.full((1, e_pad), n_pad, jnp.int32).at[0, :e].set(edge_index[1].astype(jnp.int32))
    bat = jnp.full((1, n_pad), b_pad, jnp.int32).at[0, :n].set(batch)
    # Host-side mean-pool normalization (1 / nodes-per-graph): removes the in-kernel
    # B x N cross-lane reduction + divide.
    cnt = jnp.zeros((b_pad,), jnp.float32).at[batch].add(1.0)
    invc = jnp.where(cnt > 0, 1.0 / jnp.maximum(cnt, 1.0), 0.0).reshape(b_pad, 1)

    args = [src, dst, bat, invc, x_p, ea_p]
    for p in pparams["convs"]:
        args += [p["we"], p["be"], p["w1"], p["b1"], p["w2"], p["b2"]]
    args += [pparams["lin1_wa"], pparams["lin1_wb"], pparams["lin1_wc"],
             pparams["lin1_b"], pparams["lin2_w"], pparams["lin2_b"]]

    out = pl.pallas_call(
        _gine_fused_kernel,
        out_shape=jax.ShapeDtypeStruct((b_pad, out_pad), jnp.float32),
        in_specs=[pl.BlockSpec(memory_space=pltpu.MemorySpace.VMEM)] * len(args),
        out_specs=pl.BlockSpec(memory_space=pltpu.MemorySpace.VMEM),
        compiler_params=pltpu.CompilerParams(vmem_limit_bytes=_vmem_limit_bytes()),
    )(*args)
    return out[:num_graphs, :pparams["out_dim"]]


# ----------------------------------------------------------------------------
# Host-side parameter prep: pad to lane-dense shapes, fold BN per-channel, split lin1
# ----------------------------------------------------------------------------
def prepare_params(params):
    pconvs = []
    for p in params["convs"]:
        de, c_in = p["we"].shape
        hid = p["w1"].shape[1]
        de_p, c_p, h_p = _rup(de, LANE), _rup(c_in, LANE), _rup(hid, LANE)
        # Per-channel eval-mode BatchNorm1d fold into the first MLP linear:
        #   BN(t) = gamma * (t - mean) / sqrt(var + eps) + beta, with t = z @ w1 + b1
        scale = p["bn_gamma"] / jnp.sqrt(p["bn_var"] + BN_EPS)
        w1f = p["w1"] * scale[None, :]
        b1f = (p["b1"] - p["bn_mean"]) * scale + p["bn_beta"]
        pconvs.append(dict(
            we=_pad2(p["we"], de_p, c_p),
            be=_pad2(p["be"][None, :], 1, c_p),
            w1=_pad2(w1f, c_p, h_p),
            b1=_pad2(b1f[None, :], 1, h_p),
            w2=_pad2(p["w2"], h_p, h_p),
            b2=_pad2(p["b2"][None, :], 1, h_p)))

    hid = params["convs"][0]["w1"].shape[1]
    h_p = _rup(hid, LANE)
    f3 = params["lin1_w"].shape[1]
    f3_p = _rup(f3, LANE)
    out_dim = params["lin2_w"].shape[1]
    out_p = _rup(out_dim, LANE)
    return dict(
        convs=pconvs,
        lin1_wa=_pad2(params["lin1_w"][0 * hid:1 * hid, :], h_p, f3_p),
        lin1_wb=_pad2(params["lin1_w"][1 * hid:2 * hid, :], h_p, f3_p),
        lin1_wc=_pad2(params["lin1_w"][2 * hid:3 * hid, :], h_p, f3_p),
        lin1_b=_pad2(params["lin1_b"][None, :], 1, f3_p),
        lin2_w=_pad2(params["lin2_w"], f3_p, out_p),
        lin2_b=_pad2(params["lin2_b"][None, :], 1, out_p),
        out_dim=int(out_dim))


# ----------------------------------------------------------------------------
# Pure-JAX f32 reference (mirrors the PyTorch forward) for a correctness check
# ----------------------------------------------------------------------------
def reference_forward(x, edge_index, edge_attr, batch, params, num_graphs):
    src, dst = edge_index[0], edge_index[1]
    ea = edge_attr.astype(jnp.float32)

    def gine_conv(h, p):
        e = ea @ p["we"] + p["be"]
        msg = jnp.maximum(h[src] + e, 0.0)
        agg = jnp.zeros_like(h).at[dst].add(msg)
        z = agg + h
        t = z @ p["w1"] + p["b1"]
        t = (t - p["bn_mean"]) * (p["bn_gamma"] / jnp.sqrt(p["bn_var"] + BN_EPS)) + p["bn_beta"]
        t = jnp.maximum(t, 0.0)
        return jnp.maximum(t @ p["w2"] + p["b2"], 0.0)

    h1 = gine_conv(x.astype(jnp.float32), params["convs"][0])
    h2 = gine_conv(h1, params["convs"][1])
    h3 = gine_conv(h2, params["convs"][2])

    def mean_pool(h):
        s = jnp.zeros((num_graphs, h.shape[1]), jnp.float32).at[batch].add(h)
        c = jnp.zeros((num_graphs,), jnp.float32).at[batch].add(1.0)
        return s / jnp.maximum(c, 1.0)[:, None]

    hcat = jnp.concatenate([mean_pool(h1), mean_pool(h2), mean_pool(h3)], axis=1)
    t = jnp.maximum(hcat @ params["lin1_w"] + params["lin1_b"], 0.0)
    y = t @ params["lin2_w"] + params["lin2_b"]
    return jax.nn.sigmoid(y)


# ----------------------------------------------------------------------------
# Deterministic parameter init (matches the PyTorch module's layer shapes),
# with non-trivial eval-mode BN statistics to exercise the per-channel fold.
# ----------------------------------------------------------------------------
def make_params(key, node_in_dim, hidden_dim, output_dim, fc_hidden_dim, num_edge_features):
    def lin(key, din, dout):
        k1, k2 = jax.random.split(key)
        s = 1.0 / np.sqrt(din)
        return (jax.random.uniform(k1, (din, dout), jnp.float32, -s, s),
                jax.random.uniform(k2, (dout,), jnp.float32, -s, s))

    convs = []
    c_in = node_in_dim
    for _ in range(3):
        key, ke, k1, k2, kbn = jax.random.split(key, 5)
        we, be = lin(ke, num_edge_features, c_in)          # GINEConv edge lin: edge_dim -> in_channels
        w1, b1 = lin(k1, c_in, hidden_dim)                 # nn Linear 1
        w2, b2 = lin(k2, hidden_dim, hidden_dim)           # nn Linear 2
        kg, kb, km, kv = jax.random.split(kbn, 4)
        convs.append(dict(
            we=we, be=be, w1=w1, b1=b1, w2=w2, b2=b2,
            bn_gamma=jax.random.uniform(kg, (hidden_dim,), jnp.float32, 0.8, 1.2),
            bn_beta=0.1 * jax.random.normal(kb, (hidden_dim,), jnp.float32),
            bn_mean=0.1 * jax.random.normal(km, (hidden_dim,), jnp.float32),
            bn_var=jax.random.uniform(kv, (hidden_dim,), jnp.float32, 0.5, 1.5)))
        c_in = hidden_dim

    key, kl1, kl2 = jax.random.split(key, 3)
    lw1, lb1 = lin(kl1, 3 * hidden_dim, 3 * fc_hidden_dim)
    lw2, lb2 = lin(kl2, 3 * fc_hidden_dim, output_dim)
    return dict(convs=convs, lin1_w=lw1, lin1_b=lb1, lin2_w=lw2, lin2_b=lb2)


# ----------------------------------------------------------------------------
if __name__ == "__main__":
    key = jax.random.PRNGKey(0)

    # small synthetic graph batch: 2 graphs x 4 nodes
    node_in_dim, hidden_dim, output_dim = 4, 32, 2
    fc_hidden_dim, num_edge_features = 32, 4
    num_nodes, num_graphs = 8, 2

    k_x, k_e, k_p = jax.random.split(key, 3)
    x = jax.random.normal(k_x, (num_nodes, node_in_dim), jnp.float32)
    # directed edges inside each 4-node graph
    src = jnp.array([0, 1, 2, 3, 1, 2, 4, 5, 6, 7, 5, 6], dtype=jnp.int32)
    dst = jnp.array([1, 2, 3, 0, 0, 1, 5, 6, 7, 4, 4, 5], dtype=jnp.int32)
    edge_index = jnp.stack([src, dst])                      # [2, E]
    edge_attr = jax.random.normal(k_e, (src.shape[0], num_edge_features), jnp.float32)
    batch = jnp.array([0, 0, 0, 0, 1, 1, 1, 1], dtype=jnp.int32)

    params = make_params(k_p, node_in_dim, hidden_dim, output_dim,
                         fc_hidden_dim, num_edge_features)
    pparams = prepare_params(params)

    out = gine_model_forward(x, edge_index, edge_attr, batch, pparams, num_graphs)
    out = jax.block_until_ready(out)

    ref = reference_forward(x, edge_index, edge_attr, batch, params, num_graphs)
    assert out.shape == (num_graphs, output_dim)
    # bf16 gather/scatter/pool operands (f32 accumulation) -> slightly looser tolerance
    # than the pure-f32 reference.
    assert bool(jnp.allclose(out, ref, atol=2e-2, rtol=2e-2)), (out, ref)
    print("KERNEL_OK")
</pallas_src>

<mosaic_0001>
module attributes {stable_mosaic.version = 11 : i64} {
  func.func @_gine_fused_kernel(%arg0: memref<16x1xi32, #tpu.memory_space<vmem>>, %arg1: memref<1x16xi32, #tpu.memory_space<vmem>>, %arg2: memref<1x16xi32, #tpu.memory_space<vmem>>, %arg3: memref<8x1xf32, #tpu.memory_space<vmem>>, %arg4: memref<16x128xf32, #tpu.memory_space<vmem>>, %arg5: memref<16x128xf32, #tpu.memory_space<vmem>>, %arg6: memref<128x128xf32, #tpu.memory_space<vmem>>, %arg7: memref<1x128xf32, #tpu.memory_space<vmem>>, %arg8: memref<128x128xf32, #tpu.memory_space<vmem>>, %arg9: memref<1x128xf32, #tpu.memory_space<vmem>>, %arg10: memref<128x128xf32, #tpu.memory_space<vmem>>, %arg11: memref<1x128xf32, #tpu.memory_space<vmem>>, %arg12: memref<128x128xf32, #tpu.memory_space<vmem>>, %arg13: memref<1x128xf32, #tpu.memory_space<vmem>>, %arg14: memref<128x128xf32, #tpu.memory_space<vmem>>, %arg15: memref<1x128xf32, #tpu.memory_space<vmem>>, %arg16: memref<128x128xf32, #tpu.memory_space<vmem>>, %arg17: memref<1x128xf32, #tpu.memory_space<vmem>>, %arg18: memref<128x128xf32, #tpu.memory_space<vmem>>, %arg19: memref<1x128xf32, #tpu.memory_space<vmem>>, %arg20: memref<128x128xf32, #tpu.memory_space<vmem>>, %arg21: memref<1x128xf32, #tpu.memory_space<vmem>>, %arg22: memref<128x128xf32, #tpu.memory_space<vmem>>, %arg23: memref<1x128xf32, #tpu.memory_space<vmem>>, %arg24: memref<128x128xf32, #tpu.memory_space<vmem>>, %arg25: memref<128x128xf32, #tpu.memory_space<vmem>>, %arg26: memref<128x128xf32, #tpu.memory_space<vmem>>, %arg27: memref<1x128xf32, #tpu.memory_space<vmem>>, %arg28: memref<128x128xf32, #tpu.memory_space<vmem>>, %arg29: memref<1x128xf32, #tpu.memory_space<vmem>>, %arg30: memref<8x128xf32, #tpu.memory_space<vmem>>) attributes {dimension_semantics = [], scalar_prefetch = 0 : i64, scratch_operands = 0 : i64, tpu.core_type = #tpu.core_type<tc>} {
    %c0 = arith.constant 0 : index
    %c0_0 = arith.constant 0 : index
    %0 = vector.load %arg0[%c0, %c0_0] : memref<16x1xi32, #tpu.memory_space<vmem>>, vector<16x1xi32>
    %c0_1 = arith.constant 0 : index
    %c0_2 = arith.constant 0 : index
    %1 = vector.load %arg1[%c0_1, %c0_2] : memref<1x16xi32, #tpu.memory_space<vmem>>, vector<1x16xi32>
    %c0_3 = arith.constant 0 : index
    %c0_4 = arith.constant 0 : index
    %2 = vector.load %arg2[%c0_3, %c0_4] : memref<1x16xi32, #tpu.memory_space<vmem>>, vector<1x16xi32>
    %3 = tpu.iota {dimensions = array<i32: 1>} : vector<16x16xi32>
    %4 = vector.broadcast %0 : vector<16x1xi32> to vector<16x16xi32>
    %5 = arith.cmpi eq, %4, %3 : vector<16x16xi32>
    %cst = arith.constant 1.000000e+00 : f32
    %cst_5 = arith.constant 0.000000e+00 : f32
    %6 = vector.broadcast %cst : f32 to vector<16x16xf32>
    %7 = vector.broadcast %cst_5 : f32 to vector<16x16xf32>
    %8 = arith.select %5, %6, %7 : vector<16x16xi1>, vector<16x16xf32>
    %9 = arith.truncf %8 : vector<16x16xf32> to vector<16x16xbf16>
    %10 = tpu.iota {dimensions = array<i32: 0>} : vector<16x16xi32>
    %11 = vector.broadcast %1 : vector<1x16xi32> to vector<16x16xi32>
    %12 = arith.cmpi eq, %11, %10 : vector<16x16xi32>
    %cst_6 = arith.constant 1.000000e+00 : f32
    %cst_7 = arith.constant 0.000000e+00 : f32
    %13 = vector.broadcast %cst_6 : f32 to vector<16x16xf32>
    %14 = vector.broadcast %cst_7 : f32 to vector<16x16xf32>
    %15 = arith.select %12, %13, %14 : vector<16x16xi1>, vector<16x16xf32>
    %16 = arith.truncf %15 : vector<16x16xf32> to vector<16x16xbf16>
    %17 = tpu.iota {dimensions = array<i32: 0>} : vector<8x16xi32>
    %18 = vector.broadcast %2 : vector<1x16xi32> to vector<8x16xi32>
    %19 = arith.cmpi eq, %18, %17 : vector<8x16xi32>
    %cst_8 = arith.constant 1.000000e+00 : f32
    %cst_9 = arith.constant 0.000000e+00 : f32
    %20 = vector.broadcast %cst_8 : f32 to vector<8x16xf32>
    %21 = vector.broadcast %cst_9 : f32 to vector<8x16xf32>
    %22 = arith.select %19, %20, %21 : vector<8x16xi1>, vector<8x16xf32>
    %23 = arith.truncf %22 : vector<8x16xf32> to vector<8x16xbf16>
    %c0_10 = arith.constant 0 : index
    %c0_11 = arith.constant 0 : index
    %24 = vector.load %arg3[%c0_10, %c0_11] : memref<8x1xf32, #tpu.memory_space<vmem>>, vector<8x1xf32>
    %c0_12 = arith.constant 0 : index
    %c0_13 = arith.constant 0 : index
    %25 = vector.load %arg4[%c0_12, %c0_13] : memref<16x128xf32, #tpu.memory_space<vmem>>, vector<16x128xf32>
    %c0_14 = arith.constant 0 : index
    %c0_15 = arith.constant 0 : index
    %26 = vector.load %arg5[%c0_14, %c0_15] : memref<16x128xf32, #tpu.memory_space<vmem>>, vector<16x128xf32>
    %c0_16 = arith.constant 0 : index
    %c0_17 = arith.constant 0 : index
    %27 = vector.load %arg6[%c0_16, %c0_17] : memref<128x128xf32, #tpu.memory_space<vmem>>, vector<128x128xf32>
    %c0_18 = arith.constant 0 : index
    %c0_19 = arith.constant 0 : index
    %28 = vector.load %arg7[%c0_18, %c0_19] : memref<1x128xf32, #tpu.memory_space<vmem>>, vector<1x128xf32>
    %c0_20 = arith.constant 0 : index
    %c0_21 = arith.constant 0 : index
    %29 = vector.load %arg8[%c0_20, %c0_21] : memref<128x128xf32, #tpu.memory_space<vmem>>, vector<128x128xf32>
    %c0_22 = arith.constant 0 : index
    %c0_23 = arith.constant 0 : index
    %30 = vector.load %arg9[%c0_22, %c0_23] : memref<1x128xf32, #tpu.memory_space<vmem>>, vector<1x128xf32>
    %c0_24 = arith.constant 0 : index
    %c0_25 = arith.constant 0 : index
    %31 = vector.load %arg10[%c0_24, %c0_25] : memref<128x128xf32, #tpu.memory_space<vmem>>, vector<128x128xf32>
    %c0_26 = arith.constant 0 : index
    %c0_27 = arith.constant 0 : index
    %32 = vector.load %arg11[%c0_26, %c0_27] : memref<1x128xf32, #tpu.memory_space<vmem>>, vector<1x128xf32>
    %cst_28 = arith.constant dense<0.000000e+00> : vector<16x128xf32>
    %33 = tpu.matmul %26, %27, %cst_28 {dimension_numbers = #tpu.dot_dimension_numbers<[1], [0], [0], [1], [0, 0, 1, 1], [], []>} : vector<16x128xf32>, vector<128x128xf32>, vector<16x128xf32> -> vector<16x128xf32>
    %34 = vector.broadcast %28 : vector<1x128xf32> to vector<16x128xf32>
    %35 = arith.addf %33, %34 : vector<16x128xf32>
    %36 = arith.truncf %25 : vector<16x128xf32> to vector<16x128xbf16>
    %cst_29 = arith.constant dense<0.000000e+00> : vector<16x128xf32>
    %37 = tpu.matmul %9, %36, %cst_29 {dimension_numbers = #tpu.dot_dimension_numbers<[1], [0], [0], [1], [0, 0, 1, 1], [], []>} : vector<16x16xbf16>, vector<16x128xbf16>, vector<16x128xf32> -> vector<16x128xf32>
    %38 = arith.addf %37, %35 : vector<16x128xf32>
    %cst_30 = arith.constant 0.000000e+00 : f32
    %39 = vector.broadcast %cst_30 : f32 to vector<16x128xf32>
    %40 = arith.maximumf %38, %39 : vector<16x128xf32>
    %41 = arith.truncf %40 : vector<16x128xf32> to vector<16x128xbf16>
    %cst_31 = arith.constant dense<0.000000e+00> : vector<16x128xf32>
    %42 = tpu.matmul %16, %41, %cst_31 {dimension_numbers = #tpu.dot_dimension_numbers<[1], [0], [0], [1], [0, 0, 1, 1], [], []>} : vector<16x16xbf16>, vector<16x128xbf16>, vector<16x128xf32> -> vector<16x128xf32>
    %43 = arith.addf %42, %25 : vector<16x128xf32>
    %cst_32 = arith.constant dense<0.000000e+00> : vector<16x128xf32>
    %44 = tpu.matmul %43, %29, %cst_32 {dimension_numbers = #tpu.dot_dimension_numbers<[1], [0], [0], [1], [0, 0, 1, 1], [], []>} : vector<16x128xf32>, vector<128x128xf32>, vector<16x128xf32> -> vector<16x128xf32>
    %45 = vector.broadcast %30 : vector<1x128xf32> to vector<16x128xf32>
    %46 = arith.addf %44, %45 : vector<16x128xf32>
    %cst_33 = arith.constant 0.000000e+00 : f32
    %47 = vector.broadcast %cst_33 : f32 to vector<16x128xf32>
    %48 = arith.maximumf %46, %47 : vector<16x128xf32>
    %cst_34 = arith.constant dense<0.000000e+00> : vector<16x128xf32>
    %49 = tpu.matmul %48, %31, %cst_34 {dimension_numbers = #tpu.dot_dimension_numbers<[1], [0], [0], [1], [0, 0, 1, 1], [], []>} : vector<16x128xf32>, vector<128x128xf32>, vector<16x128xf32> -> vector<16x128xf32>
    %50 = vector.broadcast %32 : vector<1x128xf32> to vector<16x128xf32>
    %51 = arith.addf %49, %50 : vector<16x128xf32>
    %cst_35 = arith.constant 0.000000e+00 : f32
    %52 = vector.broadcast %cst_35 : f32 to vector<16x128xf32>
    %53 = arith.maximumf %51, %52 : vector<16x128xf32>
    %54 = arith.truncf %53 : vector<16x128xf32> to vector<16x128xbf16>
    %cst_36 = arith.constant dense<0.000000e+00> : vector<8x128xf32>
    %55 = tpu.matmul %23, %54, %cst_36 {dimension_numbers = #tpu.dot_dimension_numbers<[1], [0], [0], [1], [0, 0, 1, 1], [], []>} : vector<8x16xbf16>, vector<16x128xbf16>, vector<8x128xf32> -> vector<8x128xf32>
    %56 = vector.broadcast %24 : vector<8x1xf32> to vector<8x128xf32>
    %57 = arith.mulf %55, %56 : vector<8x128xf32>
    %c0_37 = arith.constant 0 : index
    %c0_38 = arith.constant 0 : index
    %58 = vector.load %arg24[%c0_37, %c0_38] : memref<128x128xf32, #tpu.memory_space<vmem>>, vector<128x128xf32>
    %cst_39 = arith.constant dense<0.000000e+00> : vector<8x128xf32>
    %59 = tpu.matmul %57, %58, %cst_39 {dimension_numbers = #tpu.dot_dimension_numbers<[1], [0], [0], [1], [0, 0, 1, 1], [], []>} : vector<8x128xf32>, vector<128x128xf32>, vector<8x128xf32> -> vector<8x128xf32>
    %c0_40 = arith.constant 0 : index
    %c0_41 = arith.constant 0 : index
    %60 = vector.load %arg12[%c0_40, %c0_41] : memref<128x128xf32, #tpu.memory_space<vmem>>, vector<128x128xf32>
    %c0_42 = arith.constant 0 : index
    %c0_43 = arith.constant 0 : index
    %61 = vector.load %arg13[%c0_42, %c0_43] : memref<1x128xf32, #tpu.memory_space<vmem>>, vector<1x128xf32>
    %c0_44 = arith.constant 0 : index
    %c0_45 = arith.constant 0 : index
    %62 = vector.load %arg14[%c0_44, %c0_45] : memref<128x128xf32, #tpu.memory_space<vmem>>, vector<128x128xf32>
    %c0_46 = arith.constant 0 : index
    %c0_47 = arith.constant 0 : index
    %63 = vector.load %arg15[%c0_46, %c0_47] : memref<1x128xf32, #tpu.memory_space<vmem>>, vector<1x128xf32>
    %c0_48 = arith.constant 0 : index
    %c0_49 = arith.constant 0 : index
    %64 = vector.load %arg16[%c0_48, %c0_49] : memref<128x128xf32, #tpu.memory_space<vmem>>, vector<128x128xf32>
    %c0_50 = arith.constant 0 : index
    %c0_51 = arith.constant 0 : index
    %65 = vector.load %arg17[%c0_50, %c0_51] : memref<1x128xf32, #tpu.memory_space<vmem>>, vector<1x128xf32>
    %cst_52 = arith.constant dense<0.000000e+00> : vector<16x128xf32>
    %66 = tpu.matmul %26, %60, %cst_52 {dimension_numbers = #tpu.dot_dimension_numbers<[1], [0], [0], [1], [0, 0, 1, 1], [], []>} : vector<16x128xf32>, vector<128x128xf32>, vector<16x128xf32> -> vector<16x128xf32>
    %67 = vector.broadcast %61 : vector<1x128xf32> to vector<16x128xf32>
    %68 = arith.addf %66, %67 : vector<16x128xf32>
    %69 = arith.truncf %53 : vector<16x128xf32> to vector<16x128xbf16>
    %cst_53 = arith.constant dense<0.000000e+00> : vector<16x128xf32>
    %70 = tpu.matmul %9, %69, %cst_53 {dimension_numbers = #tpu.dot_dimension_numbers<[1], [0], [0], [1], [0, 0, 1, 1], [], []>} : vector<16x16xbf16>, vector<16x128xbf16>, vector<16x128xf32> -> vector<16x128xf32>
    %71 = arith.addf %70, %68 : vector<16x128xf32>
    %cst_54 = arith.constant 0.000000e+00 : f32
    %72 = vector.broadcast %cst_54 : f32 to vector<16x128xf32>
    %73 = arith.maximumf %71, %72 : vector<16x128xf32>
    %74 = arith.truncf %73 : vector<16x128xf32> to vector<16x128xbf16>
    %cst_55 = arith.constant dense<0.000000e+00> : vector<16x128xf32>
    %75 = tpu.matmul %16, %74, %cst_55 {dimension_numbers = #tpu.dot_dimension_numbers<[1], [0], [0], [1], [0, 0, 1, 1], [], []>} : vector<16x16xbf16>, vector<16x128xbf16>, vector<16x128xf32> -> vector<16x128xf32>
    %76 = arith.addf %75, %53 : vector<16x128xf32>
    %cst_56 = arith.constant dense<0.000000e+00> : vector<16x128xf32>
    %77 = tpu.matmul %76, %62, %cst_56 {dimension_numbers = #tpu.dot_dimension_numbers<[1], [0], [0], [1], [0, 0, 1, 1], [], []>} : vector<16x128xf32>, vector<128x128xf32>, vector<16x128xf32> -> vector<16x128xf32>
    %78 = vector.broadcast %63 : vector<1x128xf32> to vector<16x128xf32>
    %79 = arith.addf %77, %78 : vector<16x128xf32>
    %cst_57 = arith.constant 0.000000e+00 : f32
    %80 = vector.broadcast %cst_57 : f32 to vector<16x128xf32>
    %81 = arith.maximumf %79, %80 : vector<16x128xf32>
    %cst_58 = arith.constant dense<0.000000e+00> : vector<16x128xf32>
    %82 = tpu.matmul %81, %64, %cst_58 {dimension_numbers = #tpu.dot_dimension_numbers<[1], [0], [0], [1], [0, 0, 1, 1], [], []>} : vector<16x128xf32>, vector<128x128xf32>, vector<16x128xf32> -> vector<16x128xf32>
    %83 = vector.broadcast %65 : vector<1x128xf32> to vector<16x128xf32>
    %84 = arith.addf %82, %83 : vector<16x128xf32>
    %cst_59 = arith.constant 0.000000e+00 : f32
    %85 = vector.broadcast %cst_59 : f32 to vector<16x128xf32>
    %86 = arith.maximumf %84, %85 : vector<16x128xf32>
    %87 = arith.truncf %86 : vector<16x128xf32> to vector<16x128xbf16>
    %cst_60 = arith.constant dense<0.000000e+00> : vector<8x128xf32>
    %88 = tpu.matmul %23, %87, %cst_60 {dimension_numbers = #tpu.dot_dimension_numbers<[1], [0], [0], [1], [0, 0, 1, 1], [], []>} : vector<8x16xbf16>, vector<16x128xbf16>, vector<8x128xf32> -> vector<8x128xf32>
    %89 = vector.broadcast %24 : vector<8x1xf32> to vector<8x128xf32>
    %90 = arith.mulf %88, %89 : vector<8x128xf32>
    %c0_61 = arith.constant 0 : index
    %c0_62 = arith.constant 0 : index
    %91 = vector.load %arg25[%c0_61, %c0_62] : memref<128x128xf32, #tpu.memory_space<vmem>>, vector<128x128xf32>
    %cst_63 = arith.constant dense<0.000000e+00> : vector<8x128xf32>
    %92 = tpu.matmul %90, %91, %cst_63 {dimension_numbers = #tpu.dot_dimension_numbers<[1], [0], [0], [1], [0, 0, 1, 1], [], []>} : vector<8x128xf32>, vector<128x128xf32>, vector<8x128xf32> -> vector<8x128xf32>
    %93 = arith.addf %59, %92 : vector<8x128xf32>
    %c0_64 = arith.constant 0 : index
    %c0_65 = arith.constant 0 : index
    %94 = vector.load %arg18[%c0_64, %c0_65] : memref<128x128xf32, #tpu.memory_space<vmem>>, vector<128x128xf32>
    %c0_66 = arith.constant 0 : index
    %c0_67 = arith.constant 0 : index
    %95 = vector.load %arg19[%c0_66, %c0_67] : memref<1x128xf32, #tpu.memory_space<vmem>>, vector<1x128xf32>
    %c0_68 = arith.constant 0 : index
    %c0_69 = arith.constant 0 : index
    %96 = vector.load %arg20[%c0_68, %c0_69] : memref<128x128xf32, #tpu.memory_space<vmem>>, vector<128x128xf32>
    %c0_70 = arith.constant 0 : index
    %c0_71 = arith.constant 0 : index
    %97 = vector.load %arg21[%c0_70, %c0_71] : memref<1x128xf32, #tpu.memory_space<vmem>>, vector<1x128xf32>
    %c0_72 = arith.constant 0 : index
    %c0_73 = arith.constant 0 : index
    %98 = vector.load %arg22[%c0_72, %c0_73] : memref<128x128xf32, #tpu.memory_space<vmem>>, vector<128x128xf32>
    %c0_74 = arith.constant 0 : index
    %c0_75 = arith.constant 0 : index
    %99 = vector.load %arg23[%c0_74, %c0_75] : memref<1x128xf32, #tpu.memory_space<vmem>>, vector<1x128xf32>
    %cst_76 = arith.constant dense<0.000000e+00> : vector<16x128xf32>
    %100 = tpu.matmul %26, %94, %cst_76 {dimension_numbers = #tpu.dot_dimension_numbers<[1], [0], [0], [1], [0, 0, 1, 1], [], []>} : vector<16x128xf32>, vector<128x128xf32>, vector<16x128xf32> -> vector<16x128xf32>
    %101 = vector.broadcast %95 : vector<1x128xf32> to vector<16x128xf32>
    %102 = arith.addf %100, %101 : vector<16x128xf32>
    %103 = arith.truncf %86 : vector<16x128xf32> to vector<16x128xbf16>
    %cst_77 = arith.constant dense<0.000000e+00> : vector<16x128xf32>
    %104 = tpu.matmul %9, %103, %cst_77 {dimension_numbers = #tpu.dot_dimension_numbers<[1], [0], [0], [1], [0, 0, 1, 1], [], []>} : vector<16x16xbf16>, vector<16x128xbf16>, vector<16x128xf32> -> vector<16x128xf32>
    %105 = arith.addf %104, %102 : vector<16x128xf32>
    %cst_78 = arith.constant 0.000000e+00 : f32
    %106 = vector.broadcast %cst_78 : f32 to vector<16x128xf32>
    %107 = arith.maximumf %105, %106 : vector<16x128xf32>
    %108 = arith.truncf %107 : vector<16x128xf32> to vector<16x128xbf16>
    %cst_79 = arith.constant dense<0.000000e+00> : vector<16x128xf32>
    %109 = tpu.matmul %16, %108, %cst_79 {dimension_numbers = #tpu.dot_dimension_numbers<[1], [0], [0], [1], [0, 0, 1, 1], [], []>} : vector<16x16xbf16>, vector<16x128xbf16>, vector<16x128xf32> -> vector<16x128xf32>
    %110 = arith.addf %109, %86 : vector<16x128xf32>
    %cst_80 = arith.constant dense<0.000000e+00> : vector<16x128xf32>
    %111 = tpu.matmul %110, %96, %cst_80 {dimension_numbers = #tpu.dot_dimension_numbers<[1], [0], [0], [1], [0, 0, 1, 1], [], []>} : vector<16x128xf32>, vector<128x128xf32>, vector<16x128xf32> -> vector<16x128xf32>
    %112 = vector.broadcast %97 : vector<1x128xf32> to vector<16x128xf32>
    %113 = arith.addf %111, %112 : vector<16x128xf32>
    %cst_81 = arith.constant 0.000000e+00 : f32
    %114 = vector.broadcast %cst_81 : f32 to vector<16x128xf32>
    %115 = arith.maximumf %113, %114 : vector<16x128xf32>
    %cst_82 = arith.constant dense<0.000000e+00> : vector<16x128xf32>
    %116 = tpu.matmul %115, %98, %cst_82 {dimension_numbers = #tpu.dot_dimension_numbers<[1], [0], [0], [1], [0, 0, 1, 1], [], []>} : vector<16x128xf32>, vector<128x128xf32>, vector<16x128xf32> -> vector<16x128xf32>
    %117 = vector.broadcast %99 : vector<1x128xf32> to vector<16x128xf32>
    %118 = arith.addf %116, %117 : vector<16x128xf32>
    %cst_83 = arith.constant 0.000000e+00 : f32
    %119 = vector.broadcast %cst_83 : f32 to vector<16x128xf32>
    %120 = arith.maximumf %118, %119 : vector<16x128xf32>
    %121 = arith.truncf %120 : vector<16x128xf32> to vector<16x128xbf16>
    %cst_84 = arith.constant dense<0.000000e+00> : vector<8x128xf32>
    %122 = tpu.matmul %23, %121, %cst_84 {dimension_numbers = #tpu.dot_dimension_numbers<[1], [0], [0], [1], [0, 0, 1, 1], [], []>} : vector<8x16xbf16>, vector<16x128xbf16>, vector<8x128xf32> -> vector<8x128xf32>
    %123 = vector.broadcast %24 : vector<8x1xf32> to vector<8x128xf32>
    %124 = arith.mulf %122, %123 : vector<8x128xf32>
    %c0_85 = arith.constant 0 : index
    %c0_86 = arith.constant 0 : index
    %125 = vector.load %arg26[%c0_85, %c0_86] : memref<128x128xf32, #tpu.memory_space<vmem>>, vector<128x128xf32>
    %cst_87 = arith.constant dense<0.000000e+00> : vector<8x128xf32>
    %126 = tpu.matmul %124, %125, %cst_87 {dimension_numbers = #tpu.dot_dimension_numbers<[1], [0], [0], [1], [0, 0, 1, 1], [], []>} : vector<8x128xf32>, vector<128x128xf32>, vector<8x128xf32> -> vector<8x128xf32>
    %127 = arith.addf %93, %126 : vector<8x128xf32>
    %c0_88 = arith.constant 0 : index
    %c0_89 = arith.constant 0 : index
    %128 = vector.load %arg27[%c0_88, %c0_89] : memref<1x128xf32, #tpu.memory_space<vmem>>, vector<1x128xf32>
    %129 = vector.broadcast %128 : vector<1x128xf32> to vector<8x128xf32>
    %130 = arith.addf %127, %129 : vector<8x128xf32>
    %cst_90 = arith.constant 0.000000e+00 : f32
    %131 = vector.broadcast %cst_90 : f32 to vector<8x128xf32>
    %132 = arith.maximumf %130, %131 : vector<8x128xf32>
    %c0_91 = arith.constant 0 : index
    %c0_92 = arith.constant 0 : index
    %133 = vector.load %arg28[%c0_91, %c0_92] : memref<128x128xf32, #tpu.memory_space<vmem>>, vector<128x128xf32>
    %cst_93 = arith.constant dense<0.000000e+00> : vector<8x128xf32>
    %134 = tpu.matmul %132, %133, %cst_93 {dimension_numbers = #tpu.dot_dimension_numbers<[1], [0], [0], [1], [0, 0, 1, 1], [], []>} : vector<8x128xf32>, vector<128x128xf32>, vector<8x128xf32> -> vector<8x128xf32>
    %c0_94 = arith.constant 0 : index
    %c0_95 = arith.constant 0 : index
    %135 = vector.load %arg29[%c0_94, %c0_95] : memref<1x128xf32, #tpu.memory_space<vmem>>, vector<1x128xf32>
    %136 = vector.broadcast %135 : vector<1x128xf32> to vector<8x128xf32>
    %137 = arith.addf %134, %136 : vector<8x128xf32>
    %cst_96 = arith.constant 0.000000e+00 : f32
    %138 = vector.broadcast %cst_96 : f32 to vector<8x128xf32>
    %139 = arith.subf %138, %137 : vector<8x128xf32>
    %140 = math.exp %139 : vector<8x128xf32>
    %cst_97 = arith.constant 1.000000e+00 : f32
    %141 = vector.broadcast %cst_97 : f32 to vector<8x128xf32>
    %142 = arith.addf %141, %140 : vector<8x128xf32>
    %143 = tpu.reciprocal %142 {approx = true} : vector<8x128xf32> -> vector<8x128xf32>
    %c0_98 = arith.constant 0 : index
    %c0_99 = arith.constant 0 : index
    %144 = vector.load %arg30[%c0_98, %c0_99] : memref<8x128xf32, #tpu.memory_space<vmem>>, vector<8x128xf32>
    tpu.vector_store %arg30[%c0_98, %c0_99], %143 {strides = array<i32>} : memref<8x128xf32, #tpu.memory_space<vmem>>, vector<8x128xf32>,
    return
  }
}

</mosaic_0001>

<bundles_post_ra>
// kernel: tpu_custom_call.1
= control target key start
LH: loop header
LB: loop body
LE: loop exit
PB: predicated region body
PF: predicated region fallthrough
CT: control target
= control target key end

     0   :  { %s3959_s6 = smov 1   ;;  %s3960_s10 = smov 2   ;;  %s4550_s0 = inlined_call_operand.smem [shape: u32[31], index: -1, kind: input, shape index: {}] }
   0x1   :  { %s4027_s5 = sld [smem:[%s4550_s0]]   ;;  %s3961_s14 = smov 3  }
   0x2   :  { %s4032_s9 = sld [smem:[%s4550_s0 + %s3959_s6]]   ;;  %s3962_s18 = smov 4  }
   0x3   :  { %s4037_s13 = sld [smem:[%s4550_s0 + %s3960_s10]]   ;;  %s3963_s22 = smov 5  }
   0x4   :  { %s4042_s17 = sld [smem:[%s4550_s0 + %s3961_s14]]   ;;  %s3964_s26 = smov 6  }
   0x5   :  { %s4047_s21 = sld [smem:[%s4550_s0 + %s3962_s18]]   ;;  %s3965_s30 = smov 7  }
   0x6   :  { %s4052_s25 = sld [smem:[%s4550_s0 + %s3963_s22]]   ;;  %s3966_s4 = smov 8  }
   0x7   :  { %4560 = sst [smem:[#allocation52_spill]] %s4027_s5  ;;  %s3967_s10 = smov 9  }
   0x8   :  { %4561 = sst [smem:[#allocation53_spill]] %s4032_s9  ;;  %s3968_s15 = smov 10  }
   0x9   :  { %4562 = sst [smem:[#allocation54_spill]] %s4037_s13  ;;  %s3969_s20 = smov 11  }
   0xa   :  { %4563 = sst [smem:[#allocation55_spill]] %s4042_s17  ;;  %s3971_s1 = smov 13  }
   0xb   :  { %s4057_s29 = sld [smem:[%s4550_s0 + %s3964_s26]]   ;;  %s3970_s26 = smov 12  }
   0xc   :  { %s4062_s3 = sld [smem:[%s4550_s0 + %s3965_s30]]   ;;  %s3972_s7 = smov 14  }
   0xd   :  { %s4067_s8 = sld [smem:[%s4550_s0 + %s3966_s4]]   ;;  %s3974_s22 = smov 16  }
   0xe   :  { %s4072_s14 = sld [smem:[%s4550_s0 + %s3967_s10]]   ;;  %s3975_s28 = smov 17  }
   0xf   :  { %s4077_s19 = sld [smem:[%s4550_s0 + %s3968_s15]]   ;;  %s3973_s15 = smov 15  }
  0x10   :  { %s4082_s24 = sld [smem:[%s4550_s0 + %s3969_s20]]  }
  0x11   :  { %s4087_s30 = sld [smem:[%s4550_s0 + %s3970_s26]]  }
  0x12   :  { %4564 = sst [smem:[#allocation56_spill]] %s4062_s3 }
  0x13   :  { %s4092_s6 = sld [smem:[%s4550_s0 + %s3971_s1]]  }
  0x14   :  { %s4097_s12 = sld [smem:[%s4550_s0 + %s3972_s7]]   ;;  %s3976_s7 = smov 18  }
  0x15   :  { %s4102_s20 = sld [smem:[%s4550_s0 + %s3973_s15]]   ;;  %s3977_s15 = smov 19  }
  0x16   :  { %4565 = sst [smem:[#allocation57_spill]] %s4082_s24 }
  0x17   :  { %s4107_s27 = sld [smem:[%s4550_s0 + %s3974_s22]]   ;;  %s3978_s22 = smov 20  }
  0x18   :  { %s4112_s4 = sld [smem:[%s4550_s0 + %s3975_s28]]   ;;  %s3979_s28 = smov 21  }
  0x19   :  { %4566 = sst [smem:[#allocation58_spill]] %s4092_s6 }
  0x1a   :  { %s4117_s13 = sld [smem:[%s4550_s0 + %s3976_s7]]   ;;  %s3980_s7 = smov 22  }
  0x1b   :  { %4567 = sst [smem:[#allocation59_spill]] %s4102_s20 }
  0x1c   :  { %s4122_s17 = sld [smem:[%s4550_s0 + %s3977_s15]]   ;;  %s3981_s15 = smov 23  }
  0x1d   :  { %s4127_s9 = sld [smem:[%s4550_s0 + %s3978_s22]]   ;;  %s3982_s22 = smov 24  }
  0x1e   :  { %4568 = sst [smem:[#allocation60_spill]] %s4112_s4 }
  0x1f   :  { %s4132_s3 = sld [smem:[%s4550_s0 + %s3979_s28]]   ;;  %s3983_s28 = smov 25  }
  0x20   :  { %s4137_s5 = sld [smem:[%s4550_s0 + %s3980_s7]]   ;;  %s3984_s7 = smov 26  }
  0x21   :  { %s4147_s4 = sld [smem:[%s4550_s0 + %s3982_s22]]   ;;  %s3986_s22 = smov 28  }
  0x22   :  { %4569 = sst [smem:[#allocation61_spill]] %s4122_s17 }
  0x23   :  { %s4142_s17 = sld [smem:[%s4550_s0 + %s3981_s15]]   ;;  %s3985_s15 = smov 27  }
  0x24   :  { %s4157_s20 = sld [smem:[%s4550_s0 + %s3984_s7]]   ;;  %s3988_s7 = smov 30  }
  0x25   :  { %4570 = sst [smem:[#allocation62_spill]] %s4132_s3 }
  0x26   :  { %s4152_s3 = sld [smem:[%s4550_s0 + %s3983_s28]]   ;;  %s3987_s28 = smov 29  }
  0x27   :  { %s4167_s6 = sld [smem:[%s4550_s0 + %s3986_s22]]  }
  0x28   :  { %s4177_s24 = sld [smem:[%s4550_s0 + %s3988_s7]]  }
  0x29   :  { %4571 = sst [smem:[#allocation63_spill]] %s4142_s17 }
  0x2a   :  { %s4162_s17 = sld [smem:[%s4550_s0 + %s3985_s15]]  }
  0x2c   :  { %4572 = sst [smem:[#allocation64_spill]] %s4152_s3 }
  0x2d   :  { %s4172_s3 = sld [smem:[%s4550_s0 + %s3987_s28]]  }
  0x2e   :  { %66 = vsyncpa [#allocation3], 0 }
  0x2f   :  { %67 = vsyncpa [#allocation6], 0 }
  0x30   :  { %68 = vsyncpa [#allocation9], 0 }
  0x31   :  { %69 = vsyncpa [#allocation12], 0 }
  0x32   :  { %70 = vsyncpa [#allocation15], 0 }
  0x33   :  { %71 = vsyncpa [#allocation18], 0 }
  0x34   :  { %72 = vsyncpa [#allocation21], 0 }
  0x35   :  { %73 = vsyncpa [#allocation24], 0 }
  0x36   :  { %74 = vsyncpa [#allocation27], 0 }
  0x37   :  { %75 = vsyncpa [#allocation30], 0 }
  0x38   :  { %76 = vsyncpa [#allocation33], 0 }
  0x39   :  { %77 = vsyncpa [#allocation36], 0 }
  0x3a   :  { %78 = vsyncpa [#allocation4], 0  ;;  %s3989_s15 = smov [#allocation5]   ;;  %s3990_s0 = smov [#allocation8]  }
  0x3b   :  { %s104_s16 = sshll.u32 %s3989_s15, 4  ;;  %s130_s18 = sshll.u32 %s3990_s0, 4  ;;  %s105_s16 = int_to_ptr.vmem [resolvable:$true] %s104_s16  ;;  %s4179_s18 = int_to_ptr.vmem [resolvable:$true] %s130_s18 }
  0x3c   :  { %s3405_s22 = scalar_lea.hbm %s4052_s25, 256 }
  0x3d   :  { %p3406_p0 = scmp.ne.s32.totalorder %s4052_s25, %s3405_s22  ;;  %p3409_p1 = scmp.lt.u32.totalorder %s3405_s22, %s4052_s25 }
  0x3f   :  { %p3411_p2 = pnand %p3409_p1, %p3406_p0 }
  0x41   :  { %3414 = shalt.err (!%p3411_p2)
}
  0x42   :  { %s3415_s23 = scalar_lea.vmem %s105_s16, 256  ;;  %p3420_p4 = scmp.lt.s32.totalorder %s105_s16, %s105_s16 }
  0x43   :  { %p3416_p3 = scmp.ne.s32.totalorder %s105_s16, %s3415_s23  ;;  %p3421_p5 = scmp.lt.s32.totalorder %s3415_s23, %s3415_s23 }
  0x45   :  { %p3422_p6 = por %p3421_p5, %p3420_p4 }
  0x47   :  { %p3423_p7 = pnand %p3422_p6, %p3416_p3 }
  0x49   :  { %3426 = shalt.err (!%p3423_p7)
}
  0x4a   :  { %s3991_s26 = smov 128   ;;  %s3992_s28 = smov 8  }
  0x4b   :  { %110 = dma.hbm_to_vmem [thread:$0]  %s4052_s25, 256, %s105_s16, [#allocation6], %s3991_s26, %s3991_s26, %s3992_s28  }
  0x4c   :  { %s3427_s1 = scalar_lea.hbm %s4067_s8, 2048 }
  0x4d   :  { %p3428_p8 = scmp.ne.s32.totalorder %s4067_s8, %s3427_s1  ;;  %p3431_p9 = scmp.lt.u32.totalorder %s3427_s1, %s4067_s8 }
  0x4f   :  { %p3433_p10 = pnand %p3431_p9, %p3428_p8 }
  0x51   :  { %3436 = shalt.err (!%p3433_p10)
}
  0x52   :  { %s3437_s2 = scalar_lea.vmem %s4179_s18, 2048  ;;  %p3442_p12 = scmp.lt.s32.totalorder %s4179_s18, %s4179_s18 }
  0x53   :  { %p3438_p11 = scmp.ne.s32.totalorder %s4179_s18, %s3437_s2  ;;  %p3443_p13 = scmp.lt.s32.totalorder %s3437_s2, %s3437_s2 }
  0x55   :  { %p3444_p0 = por %p3443_p13, %p3442_p12 }
  0x57   :  { %p3445_p1 = pnand %p3444_p0, %p3438_p11 }
  0x59   :  { %3448 = shalt.err (!%p3445_p1)
}
  0x5a   :  { %136 = dma.hbm_to_vmem [thread:$0]  %s4067_s8, 2048, %s4179_s18, [#allocation9], %s3991_s26, %s3991_s26, %s3992_s28  }
  0x5b   :  { %s3993_s25 = smov [#allocation11]   ;;  %s3994_s10 = smov [#allocation14]  }
  0x5c   :  { %s152_s7 = sshll.u32 %s3993_s25, 4  ;;  %s174_s11 = sshll.u32 %s3994_s10, 4  ;;  %s153_s7 = int_to_ptr.vmem [resolvable:$true] %s152_s7  ;;  %s4200_s11 = int_to_ptr.vmem [resolvable:$true] %s174_s11 }
  0x5d   :  { %s3449_s15 = scalar_lea.hbm %s4077_s19, 2048 }
  0x5e   :  { %p3450_p2 = scmp.ne.s32.totalorder %s4077_s19, %s3449_s15  ;;  %p3453_p3 = scmp.lt.u32.totalorder %s3449_s15, %s4077_s19 }
  0x60   :  { %p3455_p4 = pnand %p3453_p3, %p3450_p2 }
  0x62   :  { %3458 = shalt.err (!%p3455_p4)
}
  0x63   :  { %s3459_s16 = scalar_lea.vmem %s153_s7, 2048  ;;  %p3464_p6 = scmp.lt.s32.totalorder %s153_s7, %s153_s7 }
  0x64   :  { %p3460_p5 = scmp.ne.s32.totalorder %s153_s7, %s3459_s16  ;;  %p3465_p7 = scmp.lt.s32.totalorder %s3459_s16, %s3459_s16 }
  0x66   :  { %p3466_p8 = por %p3465_p7, %p3464_p6 }
  0x68   :  { %p3467_p9 = pnand %p3466_p8, %p3460_p5 }
  0x6a   :  { %3470 = shalt.err (!%p3467_p9)
}
  0x6b   :  { %158 = dma.hbm_to_vmem [thread:$0]  %s4077_s19, 2048, %s153_s7, [#allocation12], %s3991_s26, %s3991_s26, %s3992_s28  }
  0x6c   :  { %s3471_s8 = scalar_lea.hbm %s4087_s30, 2048 }
  0x6d   :  { %p3472_p10 = scmp.ne.s32.totalorder %s4087_s30, %s3471_s8  ;;  %p3475_p11 = scmp.lt.u32.totalorder %s3471_s8, %s4087_s30 }
  0x6f   :  { %p3477_p12 = pnand %p3475_p11, %p3472_p10 }
  0x71   :  { %3480 = shalt.err (!%p3477_p12)
}
  0x72   :  { %s3481_s0 = scalar_lea.vmem %s4200_s11, 2048  ;;  %p3486_p0 = scmp.lt.s32.totalorder %s4200_s11, %s4200_s11 }
  0x73   :  { %p3482_p13 = scmp.ne.s32.totalorder %s4200_s11, %s3481_s0  ;;  %p3487_p1 = scmp.lt.s32.totalorder %s3481_s0, %s3481_s0 }
  0x75   :  { %p3488_p2 = por %p3487_p1, %p3486_p0 }
  0x77   :  { %p3489_p3 = pnand %p3488_p2, %p3482_p13 }
  0x79   :  { %3492 = shalt.err (!%p3489_p3)
}
  0x7a   :  { %180 = dma.hbm_to_vmem [thread:$0]  %s4087_s30, 2048, %s4200_s11, [#allocation15], %s3991_s26, %s3991_s26, %s3992_s28  }
  0x7b   :  { %s3995_s19 = smov [#allocation17]   ;;  %s3996_s22 = smov [#allocation20]  }
  0x7c   :  { %s196_s18 = sshll.u32 %s3995_s19, 4  ;;  %s218_s23 = sshll.u32 %s3996_s22, 4  ;;  %s197_s18 = int_to_ptr.vmem [resolvable:$true] %s196_s18  ;;  %s4221_s23 = int_to_ptr.vmem [resolvable:$true] %s218_s23 }
  0x7d   :  { %s3493_s1 = scalar_lea.hbm %s4097_s12, 2048 }
  0x7e   :  { %p3494_p4 = scmp.ne.s32.totalorder %s4097_s12, %s3493_s1  ;;  %p3497_p5 = scmp.lt.u32.totalorder %s3493_s1, %s4097_s12 }
  0x80   :  { %p3499_p6 = pnand %p3497_p5, %p3494_p4 }
  0x82   :  { %3502 = shalt.err (!%p3499_p6)
}
  0x83   :  { %s3503_s2 = scalar_lea.vmem %s197_s18, 2048  ;;  %p3508_p8 = scmp.lt.s32.totalorder %s197_s18, %s197_s18 }
  0x84   :  { %p3504_p7 = scmp.ne.s32.totalorder %s197_s18, %s3503_s2  ;;  %p3509_p9 = scmp.lt.s32.totalorder %s3503_s2, %s3503_s2 }
  0x86   :  { %p3510_p10 = por %p3509_p9, %p3508_p8 }
  0x88   :  { %p3511_p11 = pnand %p3510_p10, %p3504_p7 }
  0x8a   :  { %3514 = shalt.err (!%p3511_p11)
}
  0x8b   :  { %202 = dma.hbm_to_vmem [thread:$0]  %s4097_s12, 2048, %s197_s18, [#allocation18], %s3991_s26, %s3991_s26, %s3992_s28  }
  0x8c   :  { %s3515_s30 = scalar_lea.hbm %s4107_s27, 2048 }
  0x8d   :  { %p3516_p12 = scmp.ne.s32.totalorder %s4107_s27, %s3515_s30  ;;  %p3519_p13 = scmp.lt.u32.totalorder %s3515_s30, %s4107_s27 }
  0x8f   :  { %p3521_p0 = pnand %p3519_p13, %p3516_p12 }
  0x91   :  { %3524 = shalt.err (!%p3521_p0)
}
  0x92   :  { %s3525_s25 = scalar_lea.vmem %s4221_s23, 2048  ;;  %p3530_p2 = scmp.lt.s32.totalorder %s4221_s23, %s4221_s23 }
  0x93   :  { %p3526_p1 = scmp.ne.s32.totalorder %s4221_s23, %s3525_s25  ;;  %p3531_p3 = scmp.lt.s32.totalorder %s3525_s25, %s3525_s25 }
  0x95   :  { %p3532_p4 = por %p3531_p3, %p3530_p2 }
  0x97   :  { %p3533_p5 = pnand %p3532_p4, %p3526_p1 }
  0x99   :  { %3536 = shalt.err (!%p3533_p5)
}
  0x9a   :  { %224 = dma.hbm_to_vmem [thread:$0]  %s4107_s27, 2048, %s4221_s23, [#allocation21], %s3991_s26, %s3991_s26, %s3992_s28  }
  0x9b   :  { %s3997_s12 = smov [#allocation23]   ;;  %s3998_s10 = smov [#allocation26]  }
  0x9c   :  { %s240_s7 = sshll.u32 %s3997_s12, 4  ;;  %s262_s11 = sshll.u32 %s3998_s10, 4  ;;  %s241_s7 = int_to_ptr.vmem [resolvable:$true] %s240_s7  ;;  %s4242_s11 = int_to_ptr.vmem [resolvable:$true] %s262_s11 }
  0x9d   :  { %s3537_s15 = scalar_lea.hbm %s4117_s13, 2048 }
  0x9e   :  { %p3538_p6 = scmp.ne.s32.totalorder %s4117_s13, %s3537_s15  ;;  %p3541_p7 = scmp.lt.u32.totalorder %s3537_s15, %s4117_s13 }
  0xa0   :  { %p3543_p8 = pnand %p3541_p7, %p3538_p6 }
  0xa2   :  { %3546 = shalt.err (!%p3543_p8)
}
  0xa3   :  { %s3547_s16 = scalar_lea.vmem %s241_s7, 2048  ;;  %p3552_p10 = scmp.lt.s32.totalorder %s241_s7, %s241_s7 }
  0xa4   :  { %p3548_p9 = scmp.ne.s32.totalorder %s241_s7, %s3547_s16  ;;  %p3553_p11 = scmp.lt.s32.totalorder %s3547_s16, %s3547_s16 }
  0xa6   :  { %p3554_p12 = por %p3553_p11, %p3552_p10 }
  0xa8   :  { %p3555_p13 = pnand %p3554_p12, %p3548_p9 }
  0xaa   :  { %3558 = shalt.err (!%p3555_p13)
}
  0xab   :  { %246 = dma.hbm_to_vmem [thread:$0]  %s4117_s13, 2048, %s241_s7, [#allocation24], %s3991_s26, %s3991_s26, %s3992_s28  }
  0xac   :  { %s3559_s27 = scalar_lea.hbm %s4127_s9, 2048 }
  0xad   :  { %p3560_p0 = scmp.ne.s32.totalorder %s4127_s9, %s3559_s27  ;;  %p3563_p1 = scmp.lt.u32.totalorder %s3559_s27, %s4127_s9 }
  0xaf   :  { %p3565_p2 = pnand %p3563_p1, %p3560_p0 }
  0xb1   :  { %3568 = shalt.err (!%p3565_p2)
}
  0xb2   :  { %s3569_s8 = scalar_lea.vmem %s4242_s11, 2048  ;;  %p3574_p4 = scmp.lt.s32.totalorder %s4242_s11, %s4242_s11 }
  0xb3   :  { %p3570_p3 = scmp.ne.s32.totalorder %s4242_s11, %s3569_s8  ;;  %p3575_p5 = scmp.lt.s32.totalorder %s3569_s8, %s3569_s8 }
  0xb5   :  { %p3576_p6 = por %p3575_p5, %p3574_p4 }
  0xb7   :  { %p3577_p7 = pnand %p3576_p6, %p3570_p3 }
  0xb9   :  { %3580 = shalt.err (!%p3577_p7)
}
  0xba   :  { %268 = dma.hbm_to_vmem [thread:$0]  %s4127_s9, 2048, %s4242_s11, [#allocation27], %s3991_s26, %s3991_s26, %s3992_s28  }
  0xbb   :  { %s3999_s13 = smov [#allocation29]   ;;  %s4000_s19 = smov [#allocation32]  }
  0xbc   :  { %s284_s0 = sshll.u32 %s3999_s13, 4  ;;  %s306_s18 = sshll.u32 %s4000_s19, 4  ;;  %s285_s0 = int_to_ptr.vmem [resolvable:$true] %s284_s0  ;;  %s4263_s18 = int_to_ptr.vmem [resolvable:$true] %s306_s18 }
  0xbd   :  { %s3581_s22 = scalar_lea.hbm %s4137_s5, 2048 }
  0xbe   :  { %p3582_p8 = scmp.ne.s32.totalorder %s4137_s5, %s3581_s22  ;;  %p3585_p9 = scmp.lt.u32.totalorder %s3581_s22, %s4137_s5 }
  0xc0   :  { %p3587_p10 = pnand %p3585_p9, %p3582_p8 }
  0xc2   :  { %3590 = shalt.err (!%p3587_p10)
}
  0xc3   :  { %s3591_s23 = scalar_lea.vmem %s285_s0, 2048  ;;  %p3596_p12 = scmp.lt.s32.totalorder %s285_s0, %s285_s0 }
  0xc4   :  { %p3592_p11 = scmp.ne.s32.totalorder %s285_s0, %s3591_s23  ;;  %p3597_p13 = scmp.lt.s32.totalorder %s3591_s23, %s3591_s23 }
  0xc6   :  { %p3598_p0 = por %p3597_p13, %p3596_p12 }
  0xc8   :  { %p3599_p1 = pnand %p3598_p0, %p3592_p11 }
  0xca   :  { %3602 = shalt.err (!%p3599_p1)
}
  0xcb   :  { %290 = dma.hbm_to_vmem [thread:$0]  %s4137_s5, 2048, %s285_s0, [#allocation30], %s3991_s26, %s3991_s26, %s3992_s28  }
  0xcc   :  { %s3603_s9 = scalar_lea.hbm %s4147_s4, 2048 }
  0xcd   :  { %p3604_p2 = scmp.ne.s32.totalorder %s4147_s4, %s3603_s9  ;;  %p3607_p3 = scmp.lt.u32.totalorder %s3603_s9, %s4147_s4 }
  0xcf   :  { %p3609_p4 = pnand %p3607_p3, %p3604_p2 }
  0xd1   :  { %3612 = shalt.err (!%p3609_p4)
}
  0xd2   :  { %s3613_s1 = scalar_lea.vmem %s4263_s18, 2048  ;;  %p3618_p6 = scmp.lt.s32.totalorder %s4263_s18, %s4263_s18 }
  0xd3   :  { %p3614_p5 = scmp.ne.s32.totalorder %s4263_s18, %s3613_s1  ;;  %p3619_p7 = scmp.lt.s32.totalorder %s3613_s1, %s3613_s1 }
  0xd5   :  { %p3620_p8 = por %p3619_p7, %p3618_p6 }
  0xd7   :  { %p3621_p9 = pnand %p3620_p8, %p3614_p5 }
  0xd9   :  { %3624 = shalt.err (!%p3621_p9)
}
  0xda   :  { %312 = dma.hbm_to_vmem [thread:$0]  %s4147_s4, 2048, %s4263_s18, [#allocation33], %s3991_s26, %s3991_s26, %s3992_s28  }
  0xdb   :  { %s4001_s5 = smov [#allocation35]   ;;  %s4002_s30 = smov [#allocation2]  }
  0xdc   :  { %s330_s2 = sshll.u32 %s4001_s5, 4  ;;  %s92_s25 = sshll.u32 %s4002_s30, 4  ;;  %s331_s2 = int_to_ptr.vmem [resolvable:$true] %s330_s2  ;;  %s4284_s25 = int_to_ptr.vmem [resolvable:$true] %s92_s25 }
  0xdd   :  { %s3625_s12 = scalar_lea.hbm %s4157_s20, 2048 }
  0xde   :  { %p3626_p10 = scmp.ne.s32.totalorder %s4157_s20, %s3625_s12  ;;  %p3629_p11 = scmp.lt.u32.totalorder %s3625_s12, %s4157_s20 }
  0xe0   :  { %p3631_p12 = pnand %p3629_p11, %p3626_p10 }
  0xe2   :  { %3634 = shalt.err (!%p3631_p12)
}
  0xe3   :  { %s3635_s7 = scalar_lea.vmem %s331_s2, 2048  ;;  %p3640_p0 = scmp.lt.s32.totalorder %s331_s2, %s331_s2 }
  0xe4   :  { %p3636_p13 = scmp.ne.s32.totalorder %s331_s2, %s3635_s7  ;;  %p3641_p1 = scmp.lt.s32.totalorder %s3635_s7, %s3635_s7 }
  0xe6   :  { %p3642_p2 = por %p3641_p1, %p3640_p0 }
  0xe8   :  { %p3643_p3 = pnand %p3642_p2, %p3636_p13 }
  0xea   :  { %3646 = shalt.err (!%p3643_p3)
}
  0xeb   :  { %336 = dma.hbm_to_vmem [thread:$0]  %s4157_s20, 2048, %s331_s2, [#allocation36], %s3991_s26, %s3991_s26, %s3992_s28  }
  0xec   :  { %s3647_s4 = scalar_lea.hbm %s4047_s21, 256 }
  0xed   :  { %p3648_p4 = scmp.ne.s32.totalorder %s4047_s21, %s3647_s4  ;;  %p3651_p5 = scmp.lt.u32.totalorder %s3647_s4, %s4047_s21 }
  0xef   :  { %p3653_p6 = pnand %p3651_p5, %p3648_p4 }
  0xf1   :  { %3656 = shalt.err (!%p3653_p6)
}
  0xf2   :  { %s3657_s10 = scalar_lea.vmem %s4284_s25, 256  ;;  %p3662_p8 = scmp.lt.s32.totalorder %s4284_s25, %s4284_s25 }
  0xf3   :  { %p3658_p7 = scmp.ne.s32.totalorder %s4284_s25, %s3657_s10  ;;  %p3663_p9 = scmp.lt.s32.totalorder %s3657_s10, %s3657_s10 }
  0xf5   :  { %p3664_p10 = por %p3663_p9, %p3662_p8 }
  0xf7   :  { %p3665_p11 = pnand %p3664_p10, %p3658_p7 }
  0xf9   :  { %3668 = shalt.err (!%p3665_p11)
}
  0xfa   :  { %98 = dma.hbm_to_vmem [thread:$0]  %s4047_s21, 256, %s4284_s25, [#allocation3], %s3991_s26, %s3991_s26, %s3992_s28  }
  0xfb   :  { %s4003_s20 = smov [#allocation7]   ;;  %s4004_s15 = smov [#allocation10]  }
  0xfc   :  { %s116_s11 = sshll.u32 %s4003_s20, 4  ;;  %s143_s16 = sshll.u32 %s4004_s15, 4  ;;  %s117_s11 = int_to_ptr.vmem [resolvable:$true] %s116_s11  ;;  %s144_s16 = int_to_ptr.vmem [resolvable:$true] %s143_s16 }
  0xfd   :  { %s3669_s27 = scalar_lea.hbm %s4057_s29, 2048 }
  0xfe   :  { %p3670_p12 = scmp.ne.s32.totalorder %s4057_s29, %s3669_s27  ;;  %p3673_p13 = scmp.lt.u32.totalorder %s3669_s27, %s4057_s29 }
 0x100   :  { %p3675_p0 = pnand %p3673_p13, %p3670_p12 }
 0x102   :  { %3678 = shalt.err (!%p3675_p0)
}
 0x103   :  { %s3679_s8 = scalar_lea.vmem %s117_s11, 2048  ;;  %p3684_p2 = scmp.lt.s32.totalorder %s117_s11, %s117_s11 }
 0x104   :  { %p3680_p1 = scmp.ne.s32.totalorder %s117_s11, %s3679_s8  ;;  %p3685_p3 = scmp.lt.s32.totalorder %s3679_s8, %s3679_s8 }
 0x106   :  { %p3686_p4 = por %p3685_p3, %p3684_p2 }
 0x108   :  { %p3687_p5 = pnand %p3686_p4, %p3680_p1 }
 0x10a   :  { %3690 = shalt.err (!%p3687_p5)
}
 0x10b   :  { %122 = dma.hbm_to_vmem [thread:$0]  %s4057_s29, 2048, %s117_s11, [#allocation6], %s3991_s26, %s3991_s26, %s3992_s28  }
 0x10c   :  { %s3691_s21 = scalar_lea.hbm %s4072_s14, 16 }
 0x10d   :  { %p3692_p6 = scmp.ne.s32.totalorder %s4072_s14, %s3691_s21  ;;  %p3695_p7 = scmp.lt.u32.totalorder %s3691_s21, %s4072_s14 }
 0x10f   :  { %p3697_p8 = pnand %p3695_p7, %p3692_p6 }
 0x111   :  { %3700 = shalt.err (!%p3697_p8)
}
 0x112   :  { %s3701_s13 = scalar_lea.vmem %s144_s16, 16  ;;  %s3705_s0 = scalar_lea.vmem %s144_s16, 32 }
 0x113   :  { %p3702_p9 = scmp.ne.s32.totalorder %s144_s16, %s3701_s13  ;;  %p3706_p10 = scmp.lt.s32.totalorder %s144_s16, %s144_s16 }
 0x114   :  { %p3707_p11 = scmp.lt.s32.totalorder %s3705_s0, %s3701_s13 }
 0x116   :  { %p3708_p12 = por %p3707_p11, %p3706_p10 }
 0x118   :  { %p3709_p13 = pnand %p3708_p12, %p3702_p9 }
 0x11a   :  { %3712 = shalt.err (!%p3709_p13)
}
 0x11b   :  { %s4573_s19 = sld [smem:[#allocation57_spill]]  ;;  %s4005_s18 = smov [#allocation13]  }
 0x11c   :  { %146 = dma.hbm_to_vmem [thread:$0]  %s4072_s14, 16, %s144_s16, [#allocation9]  }
 0x11d   :  { %s165_s29 = sshll.u32 %s4005_s18, 4  ;;  %s4006_s22 = smov [#allocation16]   ;;  %s166_s29 = int_to_ptr.vmem [resolvable:$true] %s165_s29 }
 0x11e   :  { %s187_s23 = sshll.u32 %s4006_s22, 4  ;;  %s188_s23 = int_to_ptr.vmem [resolvable:$true] %s187_s23 }
 0x121   :  { %s3713_s9 = scalar_lea.hbm %s4573_s19, 16 }
 0x122   :  { %p3714_p0 = scmp.ne.s32.totalorder %s4573_s19, %s3713_s9  ;;  %p3717_p1 = scmp.lt.u32.totalorder %s3713_s9, %s4573_s19 }
 0x124   :  { %p3719_p2 = pnand %p3717_p1, %p3714_p0 }
 0x126   :  { %3722 = shalt.err (!%p3719_p2)
}
 0x127   :  { %s3723_s1 = scalar_lea.vmem %s166_s29, 16  ;;  %s3727_s5 = scalar_lea.vmem %s166_s29, 32 }
 0x128   :  { %p3724_p3 = scmp.ne.s32.totalorder %s166_s29, %s3723_s1  ;;  %p3728_p4 = scmp.lt.s32.totalorder %s166_s29, %s166_s29 }
 0x129   :  { %p3729_p5 = scmp.lt.s32.totalorder %s3727_s5, %s3723_s1 }
 0x12b   :  { %p3730_p6 = por %p3729_p5, %p3728_p4 }
 0x12d   :  { %p3731_p7 = pnand %p3730_p6, %p3724_p3 }
 0x12f   :  { %3734 = shalt.err (!%p3731_p7)
}
 0x130   :  { %s4574_s14 = sld [smem:[#allocation58_spill]] }
 0x131   :  { %168 = dma.hbm_to_vmem [thread:$0]  %s4573_s19, 16, %s166_s29, [#allocation12]  }
 0x136   :  { %s3735_s2 = scalar_lea.hbm %s4574_s14, 16 }
 0x137   :  { %p3736_p8 = scmp.ne.s32.totalorder %s4574_s14, %s3735_s2  ;;  %p3739_p9 = scmp.lt.u32.totalorder %s3735_s2, %s4574_s14 }
 0x139   :  { %p3741_p10 = pnand %p3739_p9, %p3736_p8 }
 0x13b   :  { %3744 = shalt.err (!%p3741_p10)
}
 0x13c   :  { %s3745_s30 = scalar_lea.vmem %s188_s23, 16  ;;  %s3749_s25 = scalar_lea.vmem %s188_s23, 32 }
 0x13d   :  { %p3746_p11 = scmp.ne.s32.totalorder %s188_s23, %s3745_s30  ;;  %p3750_p12 = scmp.lt.s32.totalorder %s188_s23, %s188_s23 }
 0x13e   :  { %p3751_p13 = scmp.lt.s32.totalorder %s3749_s25, %s3745_s30 }
 0x140   :  { %p3752_p0 = por %p3751_p13, %p3750_p12 }
 0x142   :  { %p3753_p1 = pnand %p3752_p0, %p3746_p11 }
 0x144   :  { %3756 = shalt.err (!%p3753_p1)
}
 0x145   :  { %s4575_s12 = sld [smem:[#allocation59_spill]]  ;;  %s4007_s7 = smov [#allocation19]  }
 0x146   :  { %190 = dma.hbm_to_vmem [thread:$0]  %s4574_s14, 16, %s188_s23, [#allocation15]  }
 0x147   :  { %s209_s4 = sshll.u32 %s4007_s7, 4  ;;  %s4008_s10 = smov [#allocation22]   ;;  %s210_s4 = int_to_ptr.vmem [resolvable:$true] %s209_s4 }
 0x148   :  { %s231_s20 = sshll.u32 %s4008_s10, 4  ;;  %s232_s20 = int_to_ptr.vmem [resolvable:$true] %s231_s20 }
 0x14b   :  { %s3757_s11 = scalar_lea.hbm %s4575_s12, 16 }
 0x14c   :  { %p3758_p2 = scmp.ne.s32.totalorder %s4575_s12, %s3757_s11  ;;  %p3761_p3 = scmp.lt.u32.totalorder %s3757_s11, %s4575_s12 }
 0x14e   :  { %p3763_p4 = pnand %p3761_p3, %p3758_p2 }
 0x150   :  { %3766 = shalt.err (!%p3763_p4)
}
 0x151   :  { %s3767_s15 = scalar_lea.vmem %s210_s4, 16  ;;  %s3771_s16 = scalar_lea.vmem %s210_s4, 32 }
 0x152   :  { %p3768_p5 = scmp.ne.s32.totalorder %s210_s4, %s3767_s15  ;;  %p3772_p6 = scmp.lt.s32.totalorder %s210_s4, %s210_s4 }
 0x153   :  { %p3773_p7 = scmp.lt.s32.totalorder %s3771_s16, %s3767_s15 }
 0x155   :  { %p3774_p8 = por %p3773_p7, %p3772_p6 }
 0x157   :  { %p3775_p9 = pnand %p3774_p8, %p3768_p5 }
 0x159   :  { %3778 = shalt.err (!%p3775_p9)
}
 0x15a   :  { %s4576_s27 = sld [smem:[#allocation60_spill]] }
 0x15b   :  { %212 = dma.hbm_to_vmem [thread:$0]  %s4575_s12, 16, %s210_s4, [#allocation18]  }
 0x160   :  { %s3779_s8 = scalar_lea.hbm %s4576_s27, 16 }
 0x161   :  { %p3780_p10 = scmp.ne.s32.totalorder %s4576_s27, %s3779_s8  ;;  %p3783_p11 = scmp.lt.u32.totalorder %s3779_s8, %s4576_s27 }
 0x163   :  { %p3785_p12 = pnand %p3783_p11, %p3780_p10 }
 0x165   :  { %3788 = shalt.err (!%p3785_p12)
}
 0x166   :  { %s3789_s21 = scalar_lea.vmem %s232_s20, 16  ;;  %s3793_s13 = scalar_lea.vmem %s232_s20, 32 }
 0x167   :  { %p3790_p13 = scmp.ne.s32.totalorder %s232_s20, %s3789_s21  ;;  %p3794_p0 = scmp.lt.s32.totalorder %s232_s20, %s232_s20 }
 0x168   :  { %p3795_p1 = scmp.lt.s32.totalorder %s3793_s13, %s3789_s21 }
 0x16a   :  { %p3796_p2 = por %p3795_p1, %p3794_p0 }
 0x16c   :  { %p3797_p3 = pnand %p3796_p2, %p3790_p13 }
 0x16e   :  { %3800 = shalt.err (!%p3797_p3)
}
 0x16f   :  { %s4577_s0 = sld [smem:[#allocation61_spill]]  ;;  %s4009_s19 = smov [#allocation25]  }
 0x170   :  { %234 = dma.hbm_to_vmem [thread:$0]  %s4576_s27, 16, %s232_s20, [#allocation21]  }
 0x171   :  { %s253_s18 = sshll.u32 %s4009_s19, 4  ;;  %s4010_s29 = smov [#allocation28]   ;;  %s254_s18 = int_to_ptr.vmem [resolvable:$true] %s253_s18 }
 0x172   :  { %s275_s22 = sshll.u32 %s4010_s29, 4  ;;  %s276_s22 = int_to_ptr.vmem [resolvable:$true] %s275_s22 }
 0x175   :  { %s3801_s23 = scalar_lea.hbm %s4577_s0, 16 }
 0x176   :  { %p3802_p4 = scmp.ne.s32.totalorder %s4577_s0, %s3801_s23  ;;  %p3805_p5 = scmp.lt.u32.totalorder %s3801_s23, %s4577_s0 }
 0x178   :  { %p3807_p6 = pnand %p3805_p5, %p3802_p4 }
 0x17a   :  { %3810 = shalt.err (!%p3807_p6)
}
 0x17b   :  { %s3811_s9 = scalar_lea.vmem %s254_s18, 16  ;;  %s3815_s1 = scalar_lea.vmem %s254_s18, 32 }
 0x17c   :  { %p3812_p7 = scmp.ne.s32.totalorder %s254_s18, %s3811_s9  ;;  %p3816_p8 = scmp.lt.s32.totalorder %s254_s18, %s254_s18 }
 0x17d   :  { %p3817_p9 = scmp.lt.s32.totalorder %s3815_s1, %s3811_s9 }
 0x17f   :  { %p3818_p10 = por %p3817_p9, %p3816_p8 }
 0x181   :  { %p3819_p11 = pnand %p3818_p10, %p3812_p7 }
 0x183   :  { %3822 = shalt.err (!%p3819_p11)
}
 0x184   :  { %s4578_s5 = sld [smem:[#allocation62_spill]] }
 0x185   :  { %256 = dma.hbm_to_vmem [thread:$0]  %s4577_s0, 16, %s254_s18, [#allocation24]  }
 0x18a   :  { %s3823_s14 = scalar_lea.hbm %s4578_s5, 16 }
 0x18b   :  { %p3824_p12 = scmp.ne.s32.totalorder %s4578_s5, %s3823_s14  ;;  %p3827_p13 = scmp.lt.u32.totalorder %s3823_s14, %s4578_s5 }
 0x18d   :  { %p3829_p0 = pnand %p3827_p13, %p3824_p12 }
 0x18f   :  { %3832 = shalt.err (!%p3829_p0)
}
 0x190   :  { %s3833_s2 = scalar_lea.vmem %s276_s22, 16  ;;  %s3837_s30 = scalar_lea.vmem %s276_s22, 32 }
 0x191   :  { %p3834_p1 = scmp.ne.s32.totalorder %s276_s22, %s3833_s2  ;;  %p3838_p2 = scmp.lt.s32.totalorder %s276_s22, %s276_s22 }
 0x192   :  { %p3839_p3 = scmp.lt.s32.totalorder %s3837_s30, %s3833_s2 }
 0x194   :  { %p3840_p4 = por %p3839_p3, %p3838_p2 }
 0x196   :  { %p3841_p5 = pnand %p3840_p4, %p3834_p1 }
 0x198   :  { %3844 = shalt.err (!%p3841_p5)
}
 0x199   :  { %s4579_s25 = sld [smem:[#allocation63_spill]]  ;;  %s4011_s12 = smov [#allocation31]  }
 0x19a   :  { %278 = dma.hbm_to_vmem [thread:$0]  %s4578_s5, 16, %s276_s22, [#allocation27]  }
 0x19b   :  { %s297_s7 = sshll.u32 %s4011_s12, 4  ;;  %s4012_s4 = smov [#allocation34]   ;;  %s298_s7 = int_to_ptr.vmem [resolvable:$true] %s297_s7 }
 0x19c   :  { %s318_s10 = sshll.u32 %s4012_s4, 4  ;;  %s4340_s10 = int_to_ptr.vmem [resolvable:$true] %s318_s10 }
 0x19f   :  { %s3845_s20 = scalar_lea.hbm %s4579_s25, 16 }
 0x1a0   :  { %p3846_p6 = scmp.ne.s32.totalorder %s4579_s25, %s3845_s20  ;;  %p3849_p7 = scmp.lt.u32.totalorder %s3845_s20, %s4579_s25 }
 0x1a2   :  { %p3851_p8 = pnand %p3849_p7, %p3846_p6 }
 0x1a4   :  { %3854 = shalt.err (!%p3851_p8)
}
 0x1a5   :  { %s3855_s11 = scalar_lea.vmem %s298_s7, 16  ;;  %s3859_s15 = scalar_lea.vmem %s298_s7, 32 }
 0x1a6   :  { %p3856_p9 = scmp.ne.s32.totalorder %s298_s7, %s3855_s11  ;;  %p3860_p10 = scmp.lt.s32.totalorder %s298_s7, %s298_s7 }
 0x1a7   :  { %p3861_p11 = scmp.lt.s32.totalorder %s3859_s15, %s3855_s11 }
 0x1a9   :  { %p3862_p12 = por %p3861_p11, %p3860_p10 }
 0x1ab   :  { %p3863_p13 = pnand %p3862_p12, %p3856_p9 }
 0x1ad   :  { %3866 = shalt.err (!%p3863_p13)
}
 0x1ae   :  { %s4580_s16 = sld [smem:[#allocation64_spill]] }
 0x1af   :  { %300 = dma.hbm_to_vmem [thread:$0]  %s4579_s25, 16, %s298_s7, [#allocation30]  }
 0x1b4   :  { %s3867_s27 = scalar_lea.hbm %s4580_s16, 2048 }
 0x1b5   :  { %p3868_p0 = scmp.ne.s32.totalorder %s4580_s16, %s3867_s27  ;;  %p3871_p1 = scmp.lt.u32.totalorder %s3867_s27, %s4580_s16 }
 0x1b7   :  { %p3873_p2 = pnand %p3871_p1, %p3868_p0 }
 0x1b9   :  { %3876 = shalt.err (!%p3873_p2)
}
 0x1ba   :  { %s3877_s8 = scalar_lea.vmem %s4340_s10, 2048  ;;  %p3882_p4 = scmp.lt.s32.totalorder %s4340_s10, %s4340_s10 }
 0x1bb   :  { %p3878_p3 = scmp.ne.s32.totalorder %s4340_s10, %s3877_s8  ;;  %p3883_p5 = scmp.lt.s32.totalorder %s3877_s8, %s3877_s8 }
 0x1bd   :  { %p3884_p6 = por %p3883_p5, %p3882_p4 }
 0x1bf   :  { %p3885_p7 = pnand %p3884_p6, %p3878_p3 }
 0x1c1   :  { %3888 = shalt.err (!%p3885_p7)
}
 0x1c2   :  { %324 = dma.hbm_to_vmem [thread:$0]  %s4580_s16, 2048, %s4340_s10, [#allocation33], %s3991_s26, %s3991_s26, %s3992_s28  }
 0x1c3   :  { %s4013_s21 = smov [#allocation37]   ;;  %s3889_s0 = scalar_lea.hbm %s4162_s17, 16 }
 0x1c4   :  { %s343_s13 = sshll.u32 %s4013_s21, 4  ;;  %p3890_p8 = scmp.ne.s32.totalorder %s4162_s17, %s3889_s0  ;;  %s344_s13 = int_to_ptr.vmem [resolvable:$true] %s343_s13 }
 0x1c5   :  { %p3893_p9 = scmp.lt.u32.totalorder %s3889_s0, %s4162_s17 }
 0x1c7   :  { %p3895_p10 = pnand %p3893_p9, %p3890_p8 }
 0x1c9   :  { %3898 = shalt.err (!%p3895_p10)
}
 0x1ca   :  { %s3899_s19 = scalar_lea.vmem %s344_s13, 16  ;;  %s3903_s18 = scalar_lea.vmem %s344_s13, 32 }
 0x1cb   :  { %p3900_p11 = scmp.ne.s32.totalorder %s344_s13, %s3899_s19  ;;  %p3904_p12 = scmp.lt.s32.totalorder %s344_s13, %s344_s13 }
 0x1cc   :  { %p3905_p13 = scmp.lt.s32.totalorder %s3903_s18, %s3899_s19 }
 0x1ce   :  { %p3906_p0 = por %p3905_p13, %p3904_p12 }
 0x1d0   :  { %p3907_p1 = pnand %p3906_p0, %p3900_p11 }
 0x1d2   :  { %3910 = shalt.err (!%p3907_p1)
}
 0x1d3   :  { %346 = dma.hbm_to_vmem [thread:$0]  %s4162_s17, 16, %s344_s13, [#allocation36]  }
 0x1d4   :  { %3933 = dma.done.wait [#allocation3], 256  }
 0x1d5   :  { %3934 = vsyncadd [#allocation3], 4294967040 }
 0x1d6   :  { %3935 = dma.done.wait [#allocation6], 2304  }
 0x1d7   :  { %3936 = vsyncadd [#allocation6], 4294964992 }
 0x1d8   :  { %3937 = dma.done.wait [#allocation9], 2064  }
 0x1d9   :  { %3938 = vsyncadd [#allocation9], 4294965232 }
 0x1da   :  { %3939 = dma.done.wait [#allocation12], 2064  }
 0x1db   :  { %3940 = vsyncadd [#allocation12], 4294965232 }
 0x1dc   :  { %3941 = dma.done.wait [#allocation15], 2064  }
 0x1dd   :  { %3942 = vsyncadd [#allocation15], 4294965232 }
 0x1de   :  { %3943 = dma.done.wait [#allocation18], 2064  }
 0x1df   :  { %3944 = vsyncadd [#allocation18], 4294965232 }
 0x1e0   :  { %3945 = dma.done.wait [#allocation21], 2064  }
 0x1e1   :  { %3946 = vsyncadd [#allocation21], 4294965232 }
 0x1e2   :  { %3947 = dma.done.wait [#allocation24], 2064  }
 0x1e3   :  { %3948 = vsyncadd [#allocation24], 4294965232 }
 0x1e4   :  { %3949 = dma.done.wait [#allocation27], 2064  }
 0x1e5   :  { %3950 = vsyncadd [#allocation27], 4294965232 }
 0x1e6   :  { %3951 = dma.done.wait [#allocation30], 2064  }
 0x1e7   :  { %3952 = vsyncadd [#allocation30], 4294965232 }
 0x1e8   :  { %3953 = dma.done.wait [#allocation33], 4096  }
 0x1e9   :  { %3954 = vsyncadd [#allocation33], 4294963200 }
 0x1ea   :  { %3955 = dma.done.wait [#allocation36], 2064  }
 0x1eb   :  { %3956 = vsyncadd [#allocation36], 4294965232  ;;  %s4581_s17 = sld [smem:[#allocation52_spill]]  ;;  %v4014_v0 = vmov 0   ;;  %v4015_v1 = vmov 0.0   ;;  %v462_v3 = vld [vmem:[#allocation7] sm:$0xff]  ;;  %v425_v33 = vlaneseq }
 0x1ec   :  { %3399 = vset.pattern.permute.xlu0 %v4014_v0  ;;  %2481 = vmatprep.subr.bf16.mxu1 %v4015_v1  ;;  %v463_v4 = vld [vmem:[#allocation7 + $0x8] sm:$0xff]  ;;  %v464_v5 = vld [vmem:[#allocation7 + $0x10] sm:$0xff]  ;;  %v465_v6 = vld [vmem:[#allocation7 + $0x18] sm:$0xff]  ;;  %vm4016_vm0 = vmmov 0   ;;  %s4582_s26 = sld [smem:[#allocation56_spill]]  ;;  %s4583_s28 = sld [smem:[#allocation53_spill]] }
 0x1ed   :  { %3400 = vset.pattern.permute.xlu1 %v4014_v0  ;;  %v2955_v8 = vpack.c.bf16 %v463_v4, %v462_v3  ;;  %v2959_v9 = vpack.c.bf16 %v465_v6, %v464_v5  ;;  %v466_v10 = vld [vmem:[#allocation7 + $0x20] sm:$0xff]  ;;  %v467_v11 = vld [vmem:[#allocation7 + $0x28] sm:$0xff]  ;;  %v468_v13 = vld [vmem:[#allocation7 + $0x30] sm:$0xff]  ;;  %2483 = vmatprep.mubr.msk.bf16.mxu1 %vm4016_vm0, %v4015_v1  ;;  %v426_v34 = vand.u32 127, %v425_v33  ;;  %vm595_vm3 = vcmask 130048   ;;  %s4584_s29 = sld [smem:[#allocation55_spill]] }
 0x1ee   :  { %v2963_v12 = vpack.c.bf16 %v467_v11, %v466_v10  ;;  %v4365_v14 = vld [vmem:[#allocation5] sm:$0xff]  ;;  %v469_v15 = vld [vmem:[#allocation7 + $0x38] sm:$0xff]  ;;  %v4368_v16 = vld [vmem:[#allocation2] sm:$0xff]  ;;  %v4388_v42 = vshrl.u32 %v425_v33, 7  ;;  %s4585_s22 = sld [smem:[#allocation54_spill]] }
 0x1ef   :  { %2956 = vmatprep.subr.bf16.mxu0 %v2955_v8  ;;  %2478 = vmatprep.mubr.f32.mxu0 %v4365_v14  ;;  %v4370_v17 = vld [vmem:[#allocation2 + $0x8] sm:$0xff]  ;;  %v2967_v19 = vpack.c.bf16 %v469_v15, %v468_v13  ;;  %v470_v20 = vld [vmem:[#allocation7 + $0x40] sm:$0xff]  ;;  %v472_v23 = vld [vmem:[#allocation7 + $0x50] sm:$0xff] }
 0x1f0   :  { %2958 = vmatpush3.bf16.msra.mxu0 %v2955_v8  ;;  %v594_v18 = vpack.c.bf16 %v4370_v17, %v4368_v16  ;;  %v471_v21 = vld [vmem:[#allocation7 + $0x48] sm:$0xff]  ;;  %v473_v24 = vld [vmem:[#allocation7 + $0x58] sm:$0xff]  ;;  %v474_v26 = vld [vmem:[#allocation7 + $0x60] sm:$0xff]  ;;  %v440_v45 = vadd.s32 8, %v4388_v42 }
 0x1f1   :  { %v421_v2 = vld [vmem:[%s4581_s17] sm:$0xff]  ;;  %v422_v7 = vld [vmem:[%s4581_s17 + $0x8] sm:$0xff]  ;;  %2960 = vmatprep.subr.bf16.mxu0 %v2959_v9  ;;  %v2971_v22 = vpack.c.bf16 %v471_v21, %v470_v20  ;;  %v2975_v25 = vpack.c.bf16 %v473_v24, %v472_v23  ;;  %v476_v29 = vld [vmem:[#allocation7 + $0x70] sm:$0xff] }
 0x1f2   :  { %428 = vperm.xlu0 %3399, %v421_v2   ;;  %2482 = vmatpush3.bf16.msra.mxu1 %v594_v18  ;;  %v475_v27 = vld [vmem:[#allocation7 + $0x68] sm:$0xff]  ;;  %v477_v30 = vld [vmem:[#allocation7 + $0x78] sm:$0xff]  ;;  %v2178_v43 = vld [vmem:[%s4582_s26] ss:$0 sm:$0xff] }
 0x1f3   :  { %2487 = vmatprep.subr.bf16.mxu1 %v4015_v1  ;;  %v2979_v28 = vpack.c.bf16 %v475_v27, %v474_v26  ;;  %v2983_v31 = vpack.c.bf16 %v477_v30, %v476_v29  ;;  %v4377_v32 = vld [vmem:[#allocation5 + $0x8] sm:$0xff]  ;;  %v2176_v46 = vld [vmem:[%s4583_s28] ss:$0 sm:$0xff]  ;;  %v480_v55 = vld [vmem:[#allocation8 + $0x8] sm:$0xff] }
 0x1f4   :  { %2962 = vmatpush3.bf16.msra.mxu0 %v2959_v9  ;;  %vm445_vm4 = vcmp.eq.s32.totalorder %v2176_v46, %v4388_v42  ;;  %vm446_vm5 = vcmp.eq.s32.totalorder %v2176_v46, %v440_v45  ;;  %v479_v54 = vld [vmem:[#allocation8] sm:$0xff]  ;;  %v481_v62 = vld [vmem:[#allocation8 + $0x10] sm:$0xff]  ;;  %v482_v63 = vld [vmem:[#allocation8 + $0x18] sm:$0xff] }
 0x1f5   :  { %2964 = vmatprep.subr.bf16.mxu0 %v2963_v12  ;;  %v447_v56 = vsel %vm445_vm4, 1.0, %v4015_v1  ;;  %v448_v59 = vsel %vm446_vm5, 1.0, %v4015_v1  ;;  %v2987_v60 = vpack.c.bf16 %v480_v55, %v479_v54  ;;  %v2991_v2 = vpack.c.bf16 %v482_v63, %v481_v62  ;;  %v483_v3 = vld [vmem:[#allocation8 + $0x20] sm:$0xff]  ;;  %v484_v4 = vld [vmem:[#allocation8 + $0x28] sm:$0xff]  ;;  %v485_v6 = vld [vmem:[#allocation8 + $0x30] sm:$0xff] }
 0x1f6   :  { %431 = vperm.xlu0 %3399, %v422_v7   ;;  %v4396_v0 = vpack.c.bf16 %v448_v59, %v447_v56  ;;  %v2995_v5 = vpack.c.bf16 %v484_v4, %v483_v3  ;;  %v486_v7 = vld [vmem:[#allocation8 + $0x38] sm:$0xff]  ;;  %v487_v9 = vld [vmem:[#allocation8 + $0x40] sm:$0xff]  ;;  %v488_v10 = vld [vmem:[#allocation8 + $0x48] sm:$0xff] }
 0x1f7   :  { %v2999_v8 = vpack.c.bf16 %v486_v7, %v485_v6  ;;  %v3003_v11 = vpack.c.bf16 %v488_v10, %v487_v9  ;;  %v490_v13 = vld [vmem:[#allocation8 + $0x58] sm:$0xff]  ;;  %v491_v18 = vld [vmem:[#allocation8 + $0x60] sm:$0xff]  ;;  %v493_v21 = vld [vmem:[#allocation8 + $0x70] sm:$0xff] }
 0x1f8   :  { %2966 = vmatpush3.bf16.msra.mxu0 %v2963_v12  ;;  %v489_v12 = vld [vmem:[#allocation8 + $0x50] sm:$0xff]  ;;  %v496_v24 = vld [vmem:[#allocation11] sm:$0xff]  ;;  %v511_v55 = vld [vmem:[#allocation11 + $0x78] sm:$0xff] }
 0x1f9   :  { %2968 = vmatprep.subr.bf16.mxu0 %v2967_v19  ;;  %v3007_v15 = vpack.c.bf16 %v490_v13, %v489_v12  ;;  %v498_v26 = vld [vmem:[#allocation11 + $0x10] sm:$0xff]  ;;  %v500_v30 = vld [vmem:[#allocation11 + $0x20] sm:$0xff]  ;;  %v509_v46 = vld [vmem:[#allocation11 + $0x68] sm:$0xff] }
 0x1fa   :  { %v508_v45 = vld [vmem:[#allocation11 + $0x60] sm:$0xff]  ;;  %v510_v54 = vld [vmem:[#allocation11 + $0x70] sm:$0xff]  ;;  %v2177_v63 = vld [vmem:[%s4585_s22] ss:$0 sm:$0xff] }
 0x1fb   :  { %v3047_v56 = vpack.c.bf16 %v511_v55, %v510_v54  ;;  %v457_v62 = vld [vmem:[%s4584_s29] sm:$0xff]  ;;  %vm454_vm6 = vcmp.eq.s32.totalorder %v2177_v63, %v4388_v42  ;;  %v921_v42 = vld [vmem:[#allocation14 + $0x10] sm:$0xff] }
 0x1fc   :  { %2970 = vmatpush3.bf16.msra.mxu0 %v2967_v19  ;;  %v492_v19 = vld [vmem:[#allocation8 + $0x68] sm:$0xff]  ;;  %899 = vperm.xlu1 %3400, %v457_v62   ;;  %v455_v10 = vsel %vm454_vm6, 1.0, %v4015_v1 }
 0x1fd   :  { %2972 = vmatprep.subr.bf16.mxu0 %v2971_v22  ;;  %v3011_v20 = vpack.c.bf16 %v492_v19, %v491_v18  ;;  %v919_v7 = vld [vmem:[#allocation14] sm:$0xff]  ;;  %v4422_v18 = vpack.c.bf16 %v455_v10, %v455_v10 }
 0x1fe   :  { %v940_v63 = vld [vmem:[#allocation17 + $0x20] sm:$0xff] }
 0x1ff   :  { %v944_v10 = vld [vmem:[#allocation17 + $0x40] sm:$0xff] }
 0x200   :  { %2974 = vmatpush3.bf16.msra.mxu0 %v2971_v22  ;;  %v494_v22 = vld [vmem:[#allocation8 + $0x78] sm:$0xff] }
 0x201   :  { %2976 = vmatprep.subr.bf16.mxu0 %v2975_v25  ;;  %v3015_v23 = vpack.c.bf16 %v494_v22, %v493_v21  ;;  %v924_v21 = vld [vmem:[#allocation14 + $0x28] sm:$0xff] }
 0x204   :  { %2978 = vmatpush3.bf16.msra.mxu0 %v2975_v25  ;;  %v497_v25 = vld [vmem:[#allocation11 + $0x8] sm:$0xff] }
 0x205   :  { %2980 = vmatprep.subr.bf16.mxu0 %v2979_v28  ;;  %v3019_v27 = vpack.c.bf16 %v497_v25, %v496_v24  ;;  %v926_v24 = vld [vmem:[#allocation14 + $0x38] sm:$0xff] }
 0x208   :  { %2982 = vmatpush3.bf16.msra.mxu0 %v2979_v28  ;;  %v499_v28 = vld [vmem:[#allocation11 + $0x18] sm:$0xff] }
 0x209   :  { %2984 = vmatprep.subr.bf16.mxu0 %v2983_v31  ;;  %v3023_v29 = vpack.c.bf16 %v499_v28, %v498_v26  ;;  %v927_v26 = vld [vmem:[#allocation14 + $0x40] sm:$0xff] }
 0x20c   :  { %2986 = vmatpush3.bf16.msra.mxu0 %v2983_v31  ;;  %v501_v31 = vld [vmem:[#allocation11 + $0x28] sm:$0xff] }
 0x20d   :  { %3020 = vmatprep.subr.bf16.mxu0 %v3019_v27  ;;  %v3027_v33 = vpack.c.bf16 %v501_v31, %v500_v30  ;;  %v930_v30 = vld [vmem:[#allocation14 + $0x58] sm:$0xff] }
 0x20f   :  { %2479 = vmatmul.mubr.f32.vlgmr.msra.gmra.mrb[0].mxu0 %v4377_v32 }
 0x210   :  { %3022 = vmatpush3.bf16.msra.mxu0 %v3019_v27  ;;  %v928_v27 = vld [vmem:[#allocation14 + $0x48] sm:$0xff] }
 0x211   :  { %3024 = vmatprep.subr.bf16.mxu0 %v3023_v29  ;;  %v3067_v28 = vpack.c.bf16 %v928_v27, %v927_v26  ;;  %v953_v26 = vld [vmem:[#allocation20] sm:$0xff]  ;;  %v954_v27 = vld [vmem:[#allocation20 + $0x8] sm:$0xff] }
 0x214   :  { %3026 = vmatpush3.bf16.msra.mxu0 %v3023_v29  ;;  %v929_v29 = vld [vmem:[#allocation14 + $0x50] sm:$0xff] }
 0x215   :  { %3028 = vmatprep.subr.bf16.mxu0 %v3027_v33  ;;  %v3071_v31 = vpack.c.bf16 %v930_v30, %v929_v29  ;;  %v3115_v29 = vpack.c.bf16 %v954_v27, %v953_v26  ;;  %v956_v30 = vld [vmem:[#allocation20 + $0x18] sm:$0xff]  ;;  %v916_v26 = vld [vmem:[#allocation32 + $0x68] sm:$0xff] }
 0x218   :  { %3030 = vmatpush3.bf16.msra.mxu0 %v3027_v33  ;;  %v931_v33 = vld [vmem:[#allocation14 + $0x60] sm:$0xff] }
 0x271   :  { %v429_v35 = vpop.permute.xlu0 %428 }
 0x272   :  { %vm433_vm1 = vcmp.eq.s32.totalorder %v429_v35, %v426_v34  ;;  %v503_v35 = vld [vmem:[#allocation11 + $0x38] sm:$0xff] }
 0x273   :  { %v435_v37 = vsel %vm433_vm1, 1.0, %v4015_v1 }
 0x275   :  { %v432_v36 = vpop.permute.xlu0 %431 }
 0x276   :  { %vm434_vm2 = vcmp.eq.s32.totalorder %v432_v36, %v426_v34  ;;  %v502_v34 = vld [vmem:[#allocation11 + $0x30] sm:$0xff] }
 0x277   :  { %v436_v38 = vsel %vm434_vm2, 1.0, %v4015_v1  ;;  %v3031_v36 = vpack.c.bf16 %v503_v35, %v502_v34  ;;  %v932_v34 = vld [vmem:[#allocation14 + $0x68] sm:$0xff] }
 0x278   :  { %v4382_v39 = vpack.c.bf16 %v436_v38, %v435_v37  ;;  %v504_v37 = vld [vmem:[#allocation11 + $0x40] sm:$0xff]  ;;  %v505_v38 = vld [vmem:[#allocation11 + $0x48] sm:$0xff]  ;;  %v3075_v35 = vpack.c.bf16 %v932_v34, %v931_v33 }
 0x279   :  { %3032 = vmatprep.subr.bf16.mxu0 %v3031_v36  ;;  %v957_v33 = vld [vmem:[#allocation20 + $0x20] sm:$0xff]  ;;  %v958_v34 = vld [vmem:[#allocation20 + $0x28] sm:$0xff] }
 0x27a   :  { %2484 = vmatmul.mubr.msk.bf16.vlgmr.msra.gmra.mrb[0].mxu1 %vm595_vm3, %v4382_v39  ;;  %3034 = vmatpush3.bf16.msra.mxu0 %v3031_v36  ;;  %v933_v36 = vld [vmem:[#allocation14 + $0x70] sm:$0xff] }
 0x27b   :  { %2489 = vmatprep.mubr.msk.bf16.mxu1 %vm4016_vm0, %v4015_v1 }
 0x2e2   :  { %v2480_v40 = vpop.f32.mrb[0].mxu0 }
 0x2e3   :  { %v585_v41 = vpop.f32.mrb[1].mxu0  ;;  %v591_v47 = vadd.f32 %v2480_v40, %v2178_v43  ;;  %v3035_v40 = vpack.c.bf16 %v505_v38, %v504_v37  ;;  %v934_v37 = vld [vmem:[#allocation14 + $0x78] sm:$0xff] }
 0x2e4   :  { %v586_v44 = vadd.f32 %v2178_v43, %v585_v41  ;;  %v506_v41 = vld [vmem:[#allocation11 + $0x50] sm:$0xff]  ;;  %v507_v43 = vld [vmem:[#allocation11 + $0x58] sm:$0xff]  ;;  %v3079_v38 = vpack.c.bf16 %v934_v37, %v933_v36 }
 0x2e5   :  { %3036 = vmatprep.subr.bf16.mxu0 %v3035_v40  ;;  %v959_v36 = vld [vmem:[#allocation20 + $0x30] sm:$0xff]  ;;  %v960_v37 = vld [vmem:[#allocation20 + $0x38] sm:$0xff] }
 0x2e6   :  { %3038 = vmatpush3.bf16.msra.mxu0 %v3035_v40 }
 0x34d   :  { %v633_v48 = vpop.f32.mrb[0].mxu1 }
 0x34e   :  { %v634_v49 = vadd.f32 %v633_v48, %v586_v44  ;;  %v2485_v50 = vpop.f32.mrb[1].mxu1  ;;  %v3039_v44 = vpack.c.bf16 %v507_v43, %v506_v41 }
 0x34f   :  { %v636_v51 = vpop.f32.mrb[2].mxu1 }
 0x350   :  { %v637_v52 = vadd.f32 %v636_v51, %v591_v47  ;;  %v2486_v53 = vpop.f32.mrb[3].mxu1  ;;  %v640_v57 = vmax.f32 %v634_v49, 0.0  ;;  %3040 = vmatprep.subr.bf16.mxu0 %v3039_v44  ;;  %v3043_v47 = vpack.c.bf16 %v509_v46, %v508_v45  ;;  %v2184_v45 = vld [vmem:[#allocation16] ss:$0 sm:$0xff] }
 0x351   :  { %3042 = vmatpush3.bf16.msra.mxu0 %v3039_v44 }
 0x352   :  { %v641_v58 = vmax.f32 %v637_v52, 0.0  ;;  %3044 = vmatprep.subr.bf16.mxu0 %v3043_v47 }
 0x354   :  { %v642_v61 = vpack.c.bf16 %v641_v58, %v640_v57 }
 0x355   :  { %3046 = vmatpush3.bf16.msra.mxu0 %v3043_v47 }
 0x356   :  { %2488 = vmatpush3.bf16.msra.mxu1 %v642_v61  ;;  %3048 = vmatprep.subr.bf16.mxu0 %v3047_v56 }
 0x357   :  { %2988 = vmatprep.subr.bf16.mxu1 %v2987_v60 }
 0x359   :  { %2490 = vmatmul.mubr.msk.bf16.vlgmr.msra.gmra.mrb[4].mxu1 %vm595_vm3, %v4396_v0  ;;  %3050 = vmatpush3.bf16.msra.mxu0 %v3047_v56  ;;  %v936_v56 = vld [vmem:[#allocation17] sm:$0xff] }
 0x35a   :  { %2990 = vmatpush3.bf16.msra.mxu1 %v2987_v60  ;;  %2610 = vmatprep.subr.bf16.mxu0 %v4015_v1 }
 0x35b   :  { %2992 = vmatprep.subr.bf16.mxu1 %v2991_v2 }
 0x35e   :  { %2994 = vmatpush3.bf16.msra.mxu1 %v2991_v2  ;;  %v2182_v2 = vld [vmem:[#allocation13] ss:$0 sm:$0xff] }
 0x35f   :  { %2996 = vmatprep.subr.bf16.mxu1 %v2995_v5 }
 0x362   :  { %2998 = vmatpush3.bf16.msra.mxu1 %v2995_v5 }
 0x363   :  { %3000 = vmatprep.subr.bf16.mxu1 %v2999_v8 }
 0x366   :  { %3002 = vmatpush3.bf16.msra.mxu1 %v2999_v8  ;;  %v920_v8 = vld [vmem:[#allocation14 + $0x8] sm:$0xff] }
 0x367   :  { %3004 = vmatprep.subr.bf16.mxu1 %v3003_v11  ;;  %v3051_v12 = vpack.c.bf16 %v920_v8, %v919_v7  ;;  %v943_v7 = vld [vmem:[#allocation17 + $0x38] sm:$0xff] }
 0x36a   :  { %3006 = vmatpush3.bf16.msra.mxu1 %v3003_v11 }
 0x36b   :  { %3008 = vmatprep.subr.bf16.mxu1 %v3007_v15 }
 0x36e   :  { %3010 = vmatpush3.bf16.msra.mxu1 %v3007_v15  ;;  %v922_v15 = vld [vmem:[#allocation14 + $0x18] sm:$0xff] }
 0x36f   :  { %3012 = vmatprep.subr.bf16.mxu1 %v3011_v20  ;;  %v3055_v19 = vpack.c.bf16 %v922_v15, %v921_v42  ;;  %v946_v42 = vld [vmem:[#allocation17 + $0x50] sm:$0xff]  ;;  %v947_v15 = vld [vmem:[#allocation17 + $0x58] sm:$0xff] }
 0x372   :  { %3014 = vmatpush3.bf16.msra.mxu1 %v3011_v20  ;;  %v923_v20 = vld [vmem:[#allocation14 + $0x20] sm:$0xff] }
 0x373   :  { %3016 = vmatprep.subr.bf16.mxu1 %v3015_v23  ;;  %v3059_v22 = vpack.c.bf16 %v924_v21, %v923_v20  ;;  %v948_v20 = vld [vmem:[#allocation17 + $0x60] sm:$0xff]  ;;  %v949_v21 = vld [vmem:[#allocation17 + $0x68] sm:$0xff] }
 0x376   :  { %3018 = vmatpush3.bf16.msra.mxu1 %v3015_v23  ;;  %v925_v23 = vld [vmem:[#allocation14 + $0x30] sm:$0xff] }
 0x377   :  { %2563 = vmatprep.subr.bf16.mxu1 %v4015_v1  ;;  %v3063_v25 = vpack.c.bf16 %v926_v24, %v925_v23  ;;  %v950_v23 = vld [vmem:[#allocation17 + $0x70] sm:$0xff]  ;;  %v951_v24 = vld [vmem:[#allocation17 + $0x78] sm:$0xff] }
 0x42c   :  { %v680_v48 = vpop.f32.mrb[4].mxu1 }
 0x42d   :  { %v681_v49 = vadd.f32 %v680_v48, %v4368_v16  ;;  %v2491_v50 = vpop.f32.mrb[5].mxu1  ;;  %v2181_v16 = vld [vmem:[#allocation10] ss:$0 sm:$0xff] }
 0x42e   :  { %v683_v51 = vpop.f32.mrb[6].mxu1 }
 0x42f   :  { %v684_v52 = vadd.f32 %v683_v51, %v4370_v17  ;;  %v2492_v53 = vpop.f32.mrb[7].mxu1  ;;  %2525 = vmatprep.mubr.f32.mxu1 %v681_v49 }
 0x431   :  { %2526 = vmatmul.mubr.f32.vlgmr.msra.gmra.mrb[8].mxu1 %v684_v52 }
 0x432   :  { %2565 = vmatprep.mubr.msk.bf16.mxu1 %vm4016_vm0, %v4015_v1 }
 0x504   :  { %v2527_v57 = vpop.f32.mrb[8].mxu1 }
 0x505   :  { %v765_v58 = vadd.f32 %v2527_v57, %v2181_v16  ;;  %v759_v59 = vpop.f32.mrb[9].mxu1 }
 0x506   :  { %v760_v17 = vadd.f32 %v2181_v16, %v759_v59  ;;  %v937_v16 = vld [vmem:[#allocation17 + $0x8] sm:$0xff] }
 0x507   :  { %v769_v61 = vmax.f32 %v765_v58, 0.0  ;;  %v3083_v59 = vpack.c.bf16 %v937_v16, %v936_v56  ;;  %v967_v16 = vld [vmem:[#allocation20 + $0x70] sm:$0xff] }
 0x508   :  { %v768_v60 = vmax.f32 %v760_v17, 0.0 }
 0x50a   :  { %2560 = vmatprep.mubr.f32.mxu0 %v768_v60  ;;  %v938_v60 = vld [vmem:[#allocation17 + $0x10] sm:$0xff] }
 0x50b   :  { %2561 = vmatmul.mubr.f32.vlgmr.msra.gmra.mrb[2].mxu0 %v769_v61  ;;  %v939_v61 = vld [vmem:[#allocation17 + $0x18] sm:$0xff] }
 0x50c   :  { %2612 = vmatprep.mubr.msk.bf16.mxu0 %vm4016_vm0, %v4015_v1  ;;  %v3087_v62 = vpack.c.bf16 %v939_v61, %v938_v60 }
 0x5de   :  { %v2562_v3 = vpop.f32.mrb[2].mxu0 }
 0x5df   :  { %v4411_v4 = vadd.f32 %v2562_v3, %v2182_v2  ;;  %v842_v5 = vpop.f32.mrb[3].mxu0 }
 0x5e0   :  { %v4413_v6 = vadd.f32 %v2182_v2, %v842_v5  ;;  %v941_v2 = vld [vmem:[#allocation17 + $0x28] sm:$0xff]  ;;  %v942_v5 = vld [vmem:[#allocation17 + $0x30] sm:$0xff] }
 0x5e1   :  { %v852_v9 = vmax.f32 %v4411_v4, 0.0  ;;  %v3091_v3 = vpack.c.bf16 %v941_v2, %v940_v63  ;;  %v3095_v8 = vpack.c.bf16 %v943_v7, %v942_v5  ;;  %v903_v4 = vld [vmem:[#allocation32] sm:$0xff]  ;;  %v906_v5 = vld [vmem:[#allocation32 + $0x18] sm:$0xff] }
 0x5e2   :  { %v851_v11 = vmax.f32 %v4413_v6, 0.0  ;;  %v2187_v6 = vld [vmem:[#allocation19] ss:$0 sm:$0xff] }
 0x5e4   :  { %v853_v13 = vpack.c.bf16 %v852_v9, %v851_v11 }
 0x5e6   :  { %2564 = vmatpush3.bf16.msra.mxu1 %v853_v13 }
 0x5e7   :  { %3052 = vmatprep.subr.bf16.mxu1 %v3051_v12 }
 0x5e9   :  { %2566 = vmatmul.mubr.msk.bf16.vlgmr.msra.gmra.mrb[12].mxu1 %vm595_vm3, %v4422_v18 }
 0x5ea   :  { %3054 = vmatpush3.bf16.msra.mxu1 %v3051_v12  ;;  %2601 = vmatprep.mubr.f32.mxu1 %v4365_v14  ;;  %v945_v12 = vld [vmem:[#allocation17 + $0x48] sm:$0xff] }
 0x5eb   :  { %3056 = vmatprep.subr.bf16.mxu1 %v3055_v19 }
 0x5ee   :  { %3058 = vmatpush3.bf16.msra.mxu1 %v3055_v19  ;;  %v3103_v19 = vpack.c.bf16 %v947_v15, %v946_v42  ;;  %v910_v42 = vld [vmem:[#allocation32 + $0x38] sm:$0xff] }
 0x5ef   :  { %3060 = vmatprep.subr.bf16.mxu1 %v3059_v22 }
 0x5f2   :  { %3062 = vmatpush3.bf16.msra.mxu1 %v3059_v22  ;;  %v3107_v22 = vpack.c.bf16 %v949_v21, %v948_v20  ;;  %v912_v20 = vld [vmem:[#allocation32 + $0x48] sm:$0xff] }
 0x5f3   :  { %3064 = vmatprep.subr.bf16.mxu1 %v3063_v25 }
 0x5f6   :  { %3066 = vmatpush3.bf16.msra.mxu1 %v3063_v25  ;;  %v3111_v25 = vpack.c.bf16 %v951_v24, %v950_v23  ;;  %v914_v23 = vld [vmem:[#allocation32 + $0x58] sm:$0xff] }
 0x5f7   :  { %3068 = vmatprep.subr.bf16.mxu1 %v3067_v28 }
 0x5fa   :  { %3070 = vmatpush3.bf16.msra.mxu1 %v3067_v28  ;;  %v955_v28 = vld [vmem:[#allocation20 + $0x10] sm:$0xff] }
 0x5fb   :  { %3072 = vmatprep.subr.bf16.mxu1 %v3071_v31 }
 0x5fe   :  { %3074 = vmatpush3.bf16.msra.mxu1 %v3071_v31  ;;  %v3119_v31 = vpack.c.bf16 %v956_v30, %v955_v28  ;;  %v917_v28 = vld [vmem:[#allocation32 + $0x70] sm:$0xff] }
 0x5ff   :  { %3076 = vmatprep.subr.bf16.mxu1 %v3075_v35 }
 0x602   :  { %3078 = vmatpush3.bf16.msra.mxu1 %v3075_v35  ;;  %v3123_v35 = vpack.c.bf16 %v958_v34, %v957_v33  ;;  %v2188_v34 = vld [vmem:[#allocation22] ss:$0 sm:$0xff] }
 0x603   :  { %3080 = vmatprep.subr.bf16.mxu1 %v3079_v38 }
 0x606   :  { %3082 = vmatpush3.bf16.msra.mxu1 %v3079_v38  ;;  %v3127_v38 = vpack.c.bf16 %v960_v37, %v959_v36 }
 0x607   :  { %2604 = vmatprep.subr.bf16.mxu1 %v4015_v1 }
 0x609   :  { %2602 = vmatmul.mubr.f32.vlgmr.msra.gmra.mrb[10].mxu1 %v4377_v32 }
 0x60a   :  { %2605 = vmatpush3.bf16.msra.mxu1 %v853_v13  ;;  %2606 = vmatprep.mubr.msk.bf16.mxu1 %vm4016_vm0, %v4015_v1  ;;  %v3099_v13 = vpack.c.bf16 %v945_v12, %v944_v10  ;;  %v908_v10 = vld [vmem:[#allocation32 + $0x28] sm:$0xff] }
 0x60b   :  { %3116 = vmatprep.subr.bf16.mxu1 %v3115_v29 }
 0x60d   :  { %2607 = vmatmul.mubr.msk.bf16.vlgmr.msra.gmra.mrb[16].mxu1 %vm595_vm3, %v4382_v39 }
 0x60e   :  { %3118 = vmatpush3.bf16.msra.mxu1 %v3115_v29  ;;  %v918_v29 = vld [vmem:[#allocation32 + $0x78] sm:$0xff] }
 0x60f   :  { %3120 = vmatprep.subr.bf16.mxu1 %v3119_v31  ;;  %v3193_v30 = vpack.c.bf16 %v918_v29, %v917_v28  ;;  %v1507_v28 = vld [vmem:[#allocation23 + $0x38] sm:$0xff] }
 0x612   :  { %3122 = vmatpush3.bf16.msra.mxu1 %v3119_v31  ;;  %v4454_v31 = vpop.permute.xlu1 %899 }
 0x613   :  { %3124 = vmatprep.subr.bf16.mxu1 %v3123_v35 }
 0x616   :  { %3126 = vmatpush3.bf16.msra.mxu1 %v3123_v35 }
 0x617   :  { %3128 = vmatprep.subr.bf16.mxu1 %v3127_v38 }
 0x61a   :  { %3130 = vmatpush3.bf16.msra.mxu1 %v3127_v38 }
 0x6bc   :  { %v4433_v40 = vpop.f32.mrb[12].mxu1 }
 0x6bd   :  { %v2567_v41 = vpop.f32.mrb[13].mxu1  ;;  %v902_v33 = vmul.f32 %v4454_v31, %v4433_v40 }
 0x6be   :  { %v894_v43 = vpop.f32.mrb[14].mxu1  ;;  %v961_v41 = vld [vmem:[#allocation20 + $0x40] sm:$0xff] }
 0x6bf   :  { %v2568_v44 = vpop.f32.mrb[15].mxu1  ;;  %v962_v43 = vld [vmem:[#allocation20 + $0x48] sm:$0xff] }
 0x6c0   :  { %v3131_v44 = vpack.c.bf16 %v962_v43, %v961_v41 }
 0x6c2   :  { %3132 = vmatprep.subr.bf16.mxu1 %v3131_v44 }
 0x6c3   :  { %3134 = vmatpush3.bf16.msra.mxu1 %v3131_v44  ;;  %v1344_v44 = vld [vmem:[#allocation34] sm:$0xff] }
 0x6dc   :  { %v2603_v46 = vpop.f32.mrb[10].mxu1 }
 0x6dd   :  { %v1042_v47 = vpop.f32.mrb[11].mxu1  ;;  %v1048_v50 = vadd.f32 %v2603_v46, %v2184_v45  ;;  %v964_v46 = vld [vmem:[#allocation20 + $0x58] sm:$0xff] }
 0x6de   :  { %v1043_v48 = vadd.f32 %v2184_v45, %v1042_v47  ;;  %v963_v45 = vld [vmem:[#allocation20 + $0x50] sm:$0xff] }
 0x6df   :  { %v3135_v47 = vpack.c.bf16 %v964_v46, %v963_v45  ;;  %v1345_v45 = vld [vmem:[#allocation34 + $0x8] sm:$0xff] }
 0x6e0   :  { %v1085_v49 = vpop.f32.mrb[16].mxu1  ;;  %v3148_v46 = vpack.c.bf16 %v1345_v45, %v1344_v44  ;;  %v1512_v45 = vld [vmem:[#allocation23 + $0x60] sm:$0xff] }
 0x6e1   :  { %v1086_v51 = vadd.f32 %v1085_v49, %v1043_v48  ;;  %v2608_v52 = vpop.f32.mrb[17].mxu1  ;;  %v965_v48 = vld [vmem:[#allocation20 + $0x60] sm:$0xff]  ;;  %v966_v49 = vld [vmem:[#allocation20 + $0x68] sm:$0xff]  ;;  %3136 = vmatprep.subr.bf16.mxu1 %v3135_v47 }
 0x6e2   :  { %v1088_v53 = vpop.f32.mrb[18].mxu1  ;;  %3138 = vmatpush3.bf16.msra.mxu1 %v3135_v47  ;;  %v1346_v47 = vld [vmem:[#allocation34 + $0x10] sm:$0xff] }
 0x6e3   :  { %v1089_v54 = vadd.f32 %v1088_v53, %v1048_v50  ;;  %v2609_v55 = vpop.f32.mrb[19].mxu1  ;;  %v1092_v57 = vmax.f32 %v1086_v51, 0.0  ;;  %v3139_v50 = vpack.c.bf16 %v966_v49, %v965_v48  ;;  %v1347_v48 = vld [vmem:[#allocation34 + $0x18] sm:$0xff] }
 0x6e4   :  { %v3151_v49 = vpack.c.bf16 %v1347_v48, %v1346_v47  ;;  %v1515_v47 = vld [vmem:[#allocation23 + $0x78] sm:$0xff] }
 0x6e5   :  { %v1093_v58 = vmax.f32 %v1089_v54, 0.0  ;;  %3140 = vmatprep.subr.bf16.mxu1 %v3139_v50 }
 0x6e6   :  { %3142 = vmatpush3.bf16.msra.mxu1 %v3139_v50  ;;  %v1348_v50 = vld [vmem:[#allocation34 + $0x20] sm:$0xff] }
 0x6e7   :  { %v1094_v17 = vpack.c.bf16 %v1093_v58, %v1092_v57  ;;  %v968_v57 = vld [vmem:[#allocation20 + $0x78] sm:$0xff] }
 0x6e8   :  { %v3143_v58 = vpack.c.bf16 %v968_v57, %v967_v16  ;;  %v1354_v57 = vld [vmem:[#allocation34 + $0x50] sm:$0xff] }
 0x6e9   :  { %2611 = vmatpush3.bf16.msra.mxu0 %v1094_v17 }
 0x6ea   :  { %3084 = vmatprep.subr.bf16.mxu0 %v3083_v59  ;;  %3144 = vmatprep.subr.bf16.mxu1 %v3143_v58 }
 0x6eb   :  { %3146 = vmatpush3.bf16.msra.mxu1 %v3143_v58  ;;  %v1355_v58 = vld [vmem:[#allocation34 + $0x58] sm:$0xff] }
 0x6ec   :  { %2613 = vmatmul.mubr.msk.bf16.vlgmr.msra.gmra.mrb[4].mxu0 %vm595_vm3, %v4396_v0 }
 0x6ed   :  { %3086 = vmatpush3.bf16.msra.mxu0 %v3083_v59  ;;  %v4017_v59 = vmov 0.0|0.0  }
 0x6ee   :  { %3088 = vmatprep.subr.bf16.mxu0 %v3087_v62  ;;  %3171 = vmatprep.subr.bf16.mxu1 %v4017_v59 }
 0x6f1   :  { %3090 = vmatpush3.bf16.msra.mxu0 %v3087_v62 }
 0x6f2   :  { %3092 = vmatprep.subr.bf16.mxu0 %v3091_v3 }
 0x6f5   :  { %3094 = vmatpush3.bf16.msra.mxu0 %v3091_v3  ;;  %v905_v3 = vld [vmem:[#allocation32 + $0x10] sm:$0xff] }
 0x6f6   :  { %3096 = vmatprep.subr.bf16.mxu0 %v3095_v8  ;;  %v3175_v7 = vpack.c.bf16 %v906_v5, %v905_v3  ;;  %v1501_v3 = vld [vmem:[#allocation23 + $0x8] sm:$0xff] }
 0x6f9   :  { %3098 = vmatpush3.bf16.msra.mxu0 %v3095_v8  ;;  %v907_v8 = vld [vmem:[#allocation32 + $0x20] sm:$0xff] }
 0x6fa   :  { %3100 = vmatprep.subr.bf16.mxu0 %v3099_v13  ;;  %v3178_v12 = vpack.c.bf16 %v908_v10, %v907_v8  ;;  %v1503_v8 = vld [vmem:[#allocation23 + $0x18] sm:$0xff] }
 0x6fd   :  { %3102 = vmatpush3.bf16.msra.mxu0 %v3099_v13  ;;  %v909_v13 = vld [vmem:[#allocation32 + $0x30] sm:$0xff] }
 0x6fe   :  { %3104 = vmatprep.subr.bf16.mxu0 %v3103_v19  ;;  %v3181_v15 = vpack.c.bf16 %v910_v42, %v909_v13 }
 0x701   :  { %3106 = vmatpush3.bf16.msra.mxu0 %v3103_v19  ;;  %v911_v19 = vld [vmem:[#allocation32 + $0x40] sm:$0xff] }
 0x702   :  { %3108 = vmatprep.subr.bf16.mxu0 %v3107_v22  ;;  %v3184_v21 = vpack.c.bf16 %v912_v20, %v911_v19 }
 0x705   :  { %3110 = vmatpush3.bf16.msra.mxu0 %v3107_v22  ;;  %v913_v22 = vld [vmem:[#allocation32 + $0x50] sm:$0xff] }
 0x706   :  { %3112 = vmatprep.subr.bf16.mxu0 %v3111_v25  ;;  %v3187_v24 = vpack.c.bf16 %v914_v23, %v913_v22  ;;  %v1504_v22 = vld [vmem:[#allocation23 + $0x20] sm:$0xff]  ;;  %v1505_v23 = vld [vmem:[#allocation23 + $0x28] sm:$0xff] }
 0x709   :  { %3114 = vmatpush3.bf16.msra.mxu0 %v3111_v25  ;;  %v915_v25 = vld [vmem:[#allocation32 + $0x60] sm:$0xff] }
 0x70a   :  { %2686 = vmatprep.subr.bf16.mxu0 %v4015_v1  ;;  %v3190_v27 = vpack.c.bf16 %v916_v26, %v915_v25  ;;  %v3203_v26 = vpack.c.bf16 %v1505_v23, %v1504_v22  ;;  %v1534_v23 = vld [vmem:[#allocation29] sm:$0xff] }
 0x7bf   :  { %v1129_v51 = vpop.f32.mrb[4].mxu0 }
 0x7c0   :  { %v1130_v52 = vadd.f32 %v1129_v51, %v851_v11  ;;  %v2614_v53 = vpop.f32.mrb[5].mxu0  ;;  %v1349_v51 = vld [vmem:[#allocation34 + $0x28] sm:$0xff] }
 0x7c1   :  { %v1132_v54 = vpop.f32.mrb[6].mxu0  ;;  %v1350_v53 = vld [vmem:[#allocation34 + $0x30] sm:$0xff] }
 0x7c2   :  { %v1133_v55 = vadd.f32 %v1132_v54, %v852_v9  ;;  %v2615_v56 = vpop.f32.mrb[7].mxu0  ;;  %2648 = vmatprep.mubr.f32.mxu0 %v1130_v52  ;;  %v904_v9 = vld [vmem:[#allocation32 + $0x8] sm:$0xff]  ;;  %v3154_v52 = vpack.c.bf16 %v1349_v51, %v1348_v50  ;;  %v1351_v54 = vld [vmem:[#allocation34 + $0x38] sm:$0xff] }
 0x7c3   :  { %v3172_v63 = vpack.c.bf16 %v904_v9, %v903_v4  ;;  %v1353_v56 = vld [vmem:[#allocation34 + $0x48] sm:$0xff] }
 0x7c4   :  { %2649 = vmatmul.mubr.f32.vlgmr.msra.gmra.mrb[8].mxu0 %v1133_v55  ;;  %v1352_v55 = vld [vmem:[#allocation34 + $0x40] sm:$0xff] }
 0x7c5   :  { %2688 = vmatprep.mubr.msk.bf16.mxu0 %vm4016_vm0, %v4015_v1  ;;  %v3160_v16 = vpack.c.bf16 %v1353_v56, %v1352_v55 }
 0x897   :  { %v2650_v11 = vpop.f32.mrb[8].mxu0 }
 0x898   :  { %v1214_v17 = vadd.f32 %v2650_v11, %v2187_v6  ;;  %v1208_v60 = vpop.f32.mrb[9].mxu0  ;;  %v1356_v11 = vld [vmem:[#allocation34 + $0x60] sm:$0xff] }
 0x899   :  { %v1209_v61 = vadd.f32 %v2187_v6, %v1208_v60  ;;  %v3163_v6 = vpack.c.bf16 %v1355_v58, %v1354_v57  ;;  %v1517_v57 = vld [vmem:[#allocation26] sm:$0xff]  ;;  %v1518_v58 = vld [vmem:[#allocation26 + $0x8] sm:$0xff] }
 0x89a   :  { %v1218_v2 = vmax.f32 %v1214_v17, 0.0  ;;  %v1357_v17 = vld [vmem:[#allocation34 + $0x68] sm:$0xff] }
 0x89b   :  { %v1217_v62 = vmax.f32 %v1209_v61, 0.0  ;;  %v3166_v4 = vpack.c.bf16 %v1357_v17, %v1356_v11  ;;  %v1358_v61 = vld [vmem:[#allocation34 + $0x70] sm:$0xff]  ;;  %v3227_v17 = vpack.c.bf16 %v1518_v58, %v1517_v57 }
 0x89c   :  { %v1549_v57 = vld [vmem:[#allocation29 + $0x78] sm:$0xff] }
 0x89d   :  { %2683 = vmatprep.mubr.f32.mxu1 %v1217_v62  ;;  %v1359_v62 = vld [vmem:[#allocation34 + $0x78] sm:$0xff] }
 0x89e   :  { %2684 = vmatmul.mubr.f32.vlgmr.msra.gmra.mrb[20].mxu1 %v1218_v2  ;;  %v1500_v2 = vld [vmem:[#allocation23] sm:$0xff] }
 0x89f   :  { %3173 = vmatpush3.bf16.msra.mxu1 %v3172_v63  ;;  %2759 = vmatprep.mubr.msk.f32.mxu1 %vm4016_vm0, %v4015_v1  ;;  %v3169_v63 = vpack.c.bf16 %v1359_v62, %v1358_v61  ;;  %v3195_v5 = vpack.c.bf16 %v1501_v3, %v1500_v2  ;;  %v1521_v61 = vld [vmem:[#allocation26 + $0x20] sm:$0xff]  ;;  %v1522_v62 = vld [vmem:[#allocation26 + $0x28] sm:$0xff]  ;;  %v1523_v2 = vld [vmem:[#allocation26 + $0x30] sm:$0xff] }
 0x8a0   :  { %3174 = vmatprep.subr.bf16.mxu1 %v4017_v59  ;;  %v1524_v3 = vld [vmem:[#allocation26 + $0x38] sm:$0xff] }
 0x8a3   :  { %3176 = vmatpush3.bf16.msra.mxu1 %v3175_v7  ;;  %v1502_v7 = vld [vmem:[#allocation23 + $0x10] sm:$0xff] }
 0x8a4   :  { %3177 = vmatprep.subr.bf16.mxu1 %v4017_v59  ;;  %v3199_v19 = vpack.c.bf16 %v1503_v8, %v1502_v7  ;;  %v1525_v7 = vld [vmem:[#allocation26 + $0x40] sm:$0xff]  ;;  %v1526_v8 = vld [vmem:[#allocation26 + $0x48] sm:$0xff] }
 0x8a7   :  { %3179 = vmatpush3.bf16.msra.mxu1 %v3178_v12 }
 0x8a8   :  { %3180 = vmatprep.subr.bf16.mxu1 %v4017_v59 }
 0x8ab   :  { %3182 = vmatpush3.bf16.msra.mxu1 %v3181_v15 }
 0x8ac   :  { %3183 = vmatprep.subr.bf16.mxu1 %v4017_v59 }
 0x8af   :  { %3185 = vmatpush3.bf16.msra.mxu1 %v3184_v21 }
 0x8b0   :  { %3186 = vmatprep.subr.bf16.mxu1 %v4017_v59 }
 0x8b3   :  { %3188 = vmatpush3.bf16.msra.mxu1 %v3187_v24 }
 0x8b4   :  { %3189 = vmatprep.subr.bf16.mxu1 %v4017_v59 }
 0x8b7   :  { %3191 = vmatpush3.bf16.msra.mxu1 %v3190_v27  ;;  %v1506_v27 = vld [vmem:[#allocation23 + $0x30] sm:$0xff] }
 0x8b8   :  { %3192 = vmatprep.subr.bf16.mxu1 %v4017_v59  ;;  %v3207_v29 = vpack.c.bf16 %v1507_v28, %v1506_v27  ;;  %v1537_v27 = vld [vmem:[#allocation29 + $0x18] sm:$0xff] }
 0x8bb   :  { %3194 = vmatpush3.bf16.msra.mxu1 %v3193_v30  ;;  %v1508_v30 = vld [vmem:[#allocation23 + $0x40] sm:$0xff] }
 0x8bc   :  { %2797 = vmatprep.subr.bf16.mxu1 %v4015_v1 }
 0x8be   :  { %2760 = vmatmul.mubr.f32.vlgmr.msra.gmra.mrb[22].mxu1 %v902_v33  ;;  %v1509_v33 = vld [vmem:[#allocation23 + $0x48] sm:$0xff] }
 0x8bf   :  { %2799 = vmatprep.mubr.msk.bf16.mxu1 %vm4016_vm0, %v4015_v1 }
 0x971   :  { %v2685_v35 = vpop.f32.mrb[20].mxu1 }
 0x972   :  { %v4461_v36 = vadd.f32 %v2685_v35, %v2188_v34  ;;  %v1291_v37 = vpop.f32.mrb[21].mxu1  ;;  %v1510_v35 = vld [vmem:[#allocation23 + $0x50] sm:$0xff] }
 0x973   :  { %v4463_v38 = vadd.f32 %v2188_v34, %v1291_v37  ;;  %v3211_v34 = vpack.c.bf16 %v1509_v33, %v1508_v30  ;;  %v1511_v37 = vld [vmem:[#allocation23 + $0x58] sm:$0xff]  ;;  %v1539_v30 = vld [vmem:[#allocation29 + $0x28] sm:$0xff] }
 0x974   :  { %v1301_v41 = vmax.f32 %v4461_v36, 0.0  ;;  %v3215_v44 = vpack.c.bf16 %v1511_v37, %v1510_v35  ;;  %v1541_v35 = vld [vmem:[#allocation29 + $0x38] sm:$0xff] }
 0x975   :  { %v1300_v43 = vmax.f32 %v4463_v38, 0.0  ;;  %v2193_v38 = vld [vmem:[#allocation28] ss:$0 sm:$0xff] }
 0x977   :  { %v1302_v40 = vpack.c.bf16 %v1301_v41, %v1300_v43 }
 0x979   :  { %2687 = vmatpush3.bf16.msra.mxu0 %v1302_v40  ;;  %2798 = vmatpush3.bf16.msra.mxu1 %v1302_v40  ;;  %v1513_v40 = vld [vmem:[#allocation23 + $0x68] sm:$0xff] }
 0x97a   :  { %3147 = vmatprep.subr.bf16.mxu0 %v4017_v59  ;;  %2803 = vmatprep.subr.bf16.mxu1 %v4015_v1 }
 0x97c   :  { %2689 = vmatmul.mubr.msk.bf16.vlgmr.msra.gmra.mrb[12].mxu0 %vm595_vm3, %v4422_v18  ;;  %2800 = vmatmul.mubr.msk.bf16.vlgmr.msra.gmra.mrb[24].mxu1 %vm595_vm3, %v4382_v39  ;;  %v3157_v39 = vpack.c.bf16 %v1351_v54, %v1350_v53 }
 0x97d   :  { %3149 = vmatpush3.bf16.msra.mxu0 %v3148_v46  ;;  %2724 = vmatprep.mubr.msk.f32.mxu0 %vm4016_vm0, %v4015_v1  ;;  %v1514_v46 = vld [vmem:[#allocation23 + $0x70] sm:$0xff] }
 0x97e   :  { %3150 = vmatprep.subr.bf16.mxu0 %v4017_v59  ;;  %2805 = vmatprep.mubr.msk.bf16.mxu1 %vm4016_vm0, %v4015_v1  ;;  %v3223_v48 = vpack.c.bf16 %v1515_v47, %v1514_v46  ;;  %v1545_v46 = vld [vmem:[#allocation29 + $0x58] sm:$0xff] }
 0x981   :  { %3152 = vmatpush3.bf16.msra.mxu0 %v3151_v49 }
 0x982   :  { %3153 = vmatprep.subr.bf16.mxu0 %v4017_v59 }
 0x985   :  { %3155 = vmatpush3.bf16.msra.mxu0 %v3154_v52  ;;  %v2190_v52 = vld [vmem:[#allocation25] ss:$0 sm:$0xff] }
 0x986   :  { %3156 = vmatprep.subr.bf16.mxu0 %v4017_v59 }
 0x989   :  { %3158 = vmatpush3.bf16.msra.mxu0 %v3157_v39 }
 0x98a   :  { %3159 = vmatprep.subr.bf16.mxu0 %v4017_v59 }
 0x98d   :  { %3161 = vmatpush3.bf16.msra.mxu0 %v3160_v16 }
 0x98e   :  { %3162 = vmatprep.subr.bf16.mxu0 %v4017_v59 }
 0x991   :  { %v4486_v60 = vpop.f32.mrb[22].mxu1  ;;  %3164 = vmatpush3.bf16.msra.mxu0 %v3163_v6 }
 0x992   :  { %v2761_v9 = vpop.f32.mrb[23].mxu1  ;;  %3165 = vmatprep.subr.bf16.mxu0 %v4017_v59 }
 0x993   :  { %v1519_v9 = vld [vmem:[#allocation26 + $0x10] sm:$0xff] }
 0x995   :  { %3167 = vmatpush3.bf16.msra.mxu0 %v3166_v4 }
 0x996   :  { %3168 = vmatprep.subr.bf16.mxu0 %v4017_v59 }
 0x999   :  { %3170 = vmatpush3.bf16.msra.mxu0 %v3169_v63  ;;  %v3235_v63 = vpack.c.bf16 %v1522_v62, %v1521_v61 }
 0x99a   :  { %3196 = vmatprep.subr.bf16.mxu0 %v3195_v5 }
 0xa4f   :  { %v1337_v10 = vpop.f32.mrb[12].mxu0  ;;  %v1666_v12 = vpop.f32.mrb[24].mxu1 }
 0xa50   :  { %v1343_v13 = vmul.f32 %v1337_v10, %v4454_v31  ;;  %v2690_v42 = vpop.f32.mrb[13].mxu0  ;;  %v2801_v15 = vpop.f32.mrb[25].mxu1  ;;  %v3243_v10 = vpack.c.bf16 %v1526_v8, %v1525_v7  ;;  %v1927_v8 = vld [vmem:[#allocation35 + $0x10] sm:$0xff] }
 0xa51   :  { %v1340_v20 = vpop.f32.mrb[14].mxu0  ;;  %v1669_v21 = vpop.f32.mrb[26].mxu1  ;;  %v1529_v15 = vld [vmem:[#allocation26 + $0x60] sm:$0xff] }
 0xa52   :  { %v2691_v24 = vpop.f32.mrb[15].mxu0  ;;  %2725 = vmatmul.mubr.f32.vlgmr.msra.gmra.mrb[10].mxu0 %v1343_v13  ;;  %v2802_v25 = vpop.f32.mrb[27].mxu1  ;;  %v1528_v13 = vld [vmem:[#allocation26 + $0x58] sm:$0xff]  ;;  %v1531_v20 = vld [vmem:[#allocation26 + $0x70] sm:$0xff] }
 0xa53   :  { %3198 = vmatpush3.bf16.msra.mxu0 %v3195_v5  ;;  %2794 = vmatprep.mubr.f32.mxu0 %v4365_v14  ;;  %v3219_v14 = vpack.c.bf16 %v1513_v40, %v1512_v45  ;;  %v3239_v5 = vpack.c.bf16 %v1524_v3, %v1523_v2  ;;  %v1535_v24 = vld [vmem:[#allocation29 + $0x8] sm:$0xff]  ;;  %v1536_v25 = vld [vmem:[#allocation29 + $0x10] sm:$0xff] }
 0xa54   :  { %3200 = vmatprep.subr.bf16.mxu0 %v3199_v19  ;;  %v3263_v28 = vpack.c.bf16 %v1537_v27, %v1536_v25  ;;  %v1543_v45 = vld [vmem:[#allocation29 + $0x48] sm:$0xff] }
 0xa55   :  { %v1925_v2 = vld [vmem:[#allocation35] sm:$0xff]  ;;  %v1926_v3 = vld [vmem:[#allocation35 + $0x8] sm:$0xff] }
 0xa56   :  { %v3292_v7 = vpack.c.bf16 %v1926_v3, %v1925_v2  ;;  %v1937_v25 = vld [vmem:[#allocation35 + $0x60] sm:$0xff] }
 0xa57   :  { %3202 = vmatpush3.bf16.msra.mxu0 %v3199_v19 }
 0xa58   :  { %3204 = vmatprep.subr.bf16.mxu0 %v3203_v26 }
 0xa5b   :  { %3206 = vmatpush3.bf16.msra.mxu0 %v3203_v26  ;;  %v3259_v26 = vpack.c.bf16 %v1535_v24, %v1534_v23  ;;  %v1936_v23 = vld [vmem:[#allocation35 + $0x58] sm:$0xff] }
 0xa5c   :  { %3208 = vmatprep.subr.bf16.mxu0 %v3207_v29 }
 0xa5f   :  { %3210 = vmatpush3.bf16.msra.mxu0 %v3207_v29  ;;  %v1538_v29 = vld [vmem:[#allocation29 + $0x20] sm:$0xff] }
 0xa60   :  { %3212 = vmatprep.subr.bf16.mxu0 %v3211_v34  ;;  %v3267_v33 = vpack.c.bf16 %v1539_v30, %v1538_v29  ;;  %v1940_v29 = vld [vmem:[#allocation35 + $0x78] sm:$0xff] }
 0xa63   :  { %3214 = vmatpush3.bf16.msra.mxu0 %v3211_v34  ;;  %v1540_v34 = vld [vmem:[#allocation29 + $0x30] sm:$0xff] }
 0xa64   :  { %3216 = vmatprep.subr.bf16.mxu0 %v3215_v44  ;;  %v3271_v37 = vpack.c.bf16 %v1541_v35, %v1540_v34  ;;  %v2022_v34 = vld [vmem:[%s4167_s6 + $0x8] sm:$0xff]  ;;  %v2023_v35 = vld [vmem:[%s4167_s6 + $0x10] sm:$0xff] }
 0xa67   :  { %3218 = vmatpush3.bf16.msra.mxu0 %v3215_v44  ;;  %v1542_v44 = vld [vmem:[#allocation29 + $0x40] sm:$0xff] }
 0xa68   :  { %3220 = vmatprep.subr.bf16.mxu0 %v3219_v14  ;;  %v3275_v40 = vpack.c.bf16 %v1543_v45, %v1542_v44  ;;  %v2024_v44 = vld [vmem:[%s4167_s6 + $0x18] sm:$0xff] }
 0xa69   :  { %v3319_v45 = vpack.c.bf16 %v2024_v44, %v2023_v35 }
 0xa6b   :  { %3222 = vmatpush3.bf16.msra.mxu0 %v3219_v14  ;;  %v1544_v14 = vld [vmem:[#allocation29 + $0x50] sm:$0xff] }
 0xa6c   :  { %3224 = vmatprep.subr.bf16.mxu0 %v3223_v48  ;;  %v3279_v47 = vpack.c.bf16 %v1545_v46, %v1544_v14  ;;  %v2026_v14 = vld [vmem:[%s4167_s6 + $0x28] sm:$0xff] }
 0xa6f   :  { %3226 = vmatpush3.bf16.msra.mxu0 %v3223_v48  ;;  %v1546_v48 = vld [vmem:[#allocation29 + $0x60] sm:$0xff] }
 0xa70   :  { %3260 = vmatprep.subr.bf16.mxu0 %v3259_v26 }
 0xa72   :  { %2795 = vmatmul.mubr.f32.vlgmr.msra.gmra.mrb[16].mxu0 %v4377_v32  ;;  %v1520_v32 = vld [vmem:[#allocation26 + $0x18] sm:$0xff] }
 0xa73   :  { %3262 = vmatpush3.bf16.msra.mxu0 %v3259_v26  ;;  %v1938_v26 = vld [vmem:[#allocation35 + $0x68] sm:$0xff] }
 0xa74   :  { %3264 = vmatprep.subr.bf16.mxu0 %v3263_v28  ;;  %v3310_v27 = vpack.c.bf16 %v1938_v26, %v1937_v25 }
 0xa77   :  { %3266 = vmatpush3.bf16.msra.mxu0 %v3263_v28  ;;  %v1939_v28 = vld [vmem:[#allocation35 + $0x70] sm:$0xff] }
 0xa78   :  { %3268 = vmatprep.subr.bf16.mxu0 %v3267_v33  ;;  %v3313_v30 = vpack.c.bf16 %v1940_v29, %v1939_v28 }
 0xa7b   :  { %3270 = vmatpush3.bf16.msra.mxu0 %v3267_v33  ;;  %v2021_v33 = vld [vmem:[%s4167_s6] sm:$0xff] }
 0xa7c   :  { %3272 = vmatprep.subr.bf16.mxu0 %v3271_v37 }
 0xa7f   :  { %3274 = vmatpush3.bf16.msra.mxu0 %v3271_v37  ;;  %v3316_v37 = vpack.c.bf16 %v2022_v34, %v2021_v33 }
 0xa80   :  { %3276 = vmatprep.subr.bf16.mxu0 %v3275_v40 }
 0xa83   :  { %3278 = vmatpush3.bf16.msra.mxu0 %v3275_v40  ;;  %v2025_v40 = vld [vmem:[%s4167_s6 + $0x20] sm:$0xff] }
 0xa84   :  { %3280 = vmatprep.subr.bf16.mxu0 %v3279_v47  ;;  %v3322_v46 = vpack.c.bf16 %v2026_v14, %v2025_v40 }
 0xa87   :  { %3282 = vmatpush3.bf16.msra.mxu0 %v3279_v47  ;;  %v2027_v47 = vld [vmem:[%s4167_s6 + $0x30] sm:$0xff] }
 0xb25   :  { %v1426_v49 = vpop.f32.mrb[10].mxu0 }
 0xb26   :  { %v4494_v50 = vadd.f32 %v4486_v60, %v1426_v49  ;;  %v2726_v51 = vpop.f32.mrb[11].mxu0  ;;  %v3231_v60 = vpack.c.bf16 %v1520_v32, %v1519_v9  ;;  %v1547_v49 = vld [vmem:[#allocation29 + $0x68] sm:$0xff] }
 0xb27   :  { %v3283_v51 = vpack.c.bf16 %v1547_v49, %v1546_v48  ;;  %v2028_v48 = vld [vmem:[%s4167_s6 + $0x38] sm:$0xff] }
 0xb28   :  { %v3325_v49 = vpack.c.bf16 %v2028_v48, %v2027_v47 }
 0xb29   :  { %3284 = vmatprep.subr.bf16.mxu0 %v3283_v51 }
 0xb2a   :  { %3286 = vmatpush3.bf16.msra.mxu0 %v3283_v51  ;;  %v2029_v51 = vld [vmem:[%s4167_s6 + $0x40] sm:$0xff] }
 0xb45   :  { %v2796_v53 = vpop.f32.mrb[16].mxu0 }
 0xb46   :  { %v1629_v54 = vadd.f32 %v2796_v53, %v2190_v52  ;;  %v1623_v39 = vpop.f32.mrb[17].mxu0 }
 0xb47   :  { %v1624_v55 = vadd.f32 %v2190_v52, %v1623_v39 }
 0xb48   :  { %v1670_v56 = vadd.f32 %v1669_v21, %v1629_v54  ;;  %v1532_v21 = vld [vmem:[#allocation26 + $0x78] sm:$0xff] }
 0xb49   :  { %v1667_v16 = vadd.f32 %v1666_v12, %v1624_v55  ;;  %v1527_v12 = vld [vmem:[#allocation26 + $0x50] sm:$0xff]  ;;  %v3255_v22 = vpack.c.bf16 %v1532_v21, %v1531_v20 }
 0xb4a   :  { %v1674_v6 = vmax.f32 %v1670_v56, 0.0  ;;  %v3247_v42 = vpack.c.bf16 %v1528_v13, %v1527_v12  ;;  %v1929_v13 = vld [vmem:[#allocation35 + $0x20] sm:$0xff]  ;;  %v1934_v21 = vld [vmem:[#allocation35 + $0x48] sm:$0xff] }
 0xb4b   :  { %v1673_v11 = vmax.f32 %v1667_v16, 0.0  ;;  %v1548_v16 = vld [vmem:[#allocation29 + $0x70] sm:$0xff] }
 0xb4c   :  { %v3287_v58 = vpack.c.bf16 %v1549_v57, %v1548_v16 }
 0xb4d   :  { %v1675_v4 = vpack.c.bf16 %v1674_v6, %v1673_v11 }
 0xb4e   :  { %3288 = vmatprep.subr.bf16.mxu0 %v3287_v58 }
 0xb4f   :  { %2804 = vmatpush3.bf16.msra.mxu1 %v1675_v4  ;;  %3290 = vmatpush3.bf16.msra.mxu0 %v3287_v58  ;;  %v2194_v4 = vld [vmem:[#allocation31] ss:$0 sm:$0xff] }
 0xb50   :  { %3228 = vmatprep.subr.bf16.mxu1 %v3227_v17  ;;  %3315 = vmatprep.subr.bf16.mxu0 %v4017_v59 }
 0xb52   :  { %2806 = vmatmul.mubr.msk.bf16.vlgmr.msra.gmra.mrb[28].mxu1 %vm595_vm3, %v4396_v0  ;;  %v1530_v0 = vld [vmem:[#allocation26 + $0x68] sm:$0xff] }
 0xb53   :  { %3230 = vmatpush3.bf16.msra.mxu1 %v3227_v17  ;;  %v3251_v19 = vpack.c.bf16 %v1530_v0, %v1529_v15  ;;  %v1931_v0 = vld [vmem:[#allocation35 + $0x30] sm:$0xff] }
 0xb54   :  { %3232 = vmatprep.subr.bf16.mxu1 %v3231_v60 }
 0xb57   :  { %3234 = vmatpush3.bf16.msra.mxu1 %v3231_v60 }
 0xb58   :  { %3236 = vmatprep.subr.bf16.mxu1 %v3235_v63 }
 0xb5b   :  { %3238 = vmatpush3.bf16.msra.mxu1 %v3235_v63 }
 0xb5c   :  { %3240 = vmatprep.subr.bf16.mxu1 %v3239_v5 }
 0xb5f   :  { %3242 = vmatpush3.bf16.msra.mxu1 %v3239_v5 }
 0xb60   :  { %3244 = vmatprep.subr.bf16.mxu1 %v3243_v10 }
 0xb63   :  { %3246 = vmatpush3.bf16.msra.mxu1 %v3243_v10  ;;  %v1928_v10 = vld [vmem:[#allocation35 + $0x18] sm:$0xff] }
 0xb64   :  { %3248 = vmatprep.subr.bf16.mxu1 %v3247_v42  ;;  %v3295_v12 = vpack.c.bf16 %v1928_v10, %v1927_v8 }
 0xb67   :  { %3250 = vmatpush3.bf16.msra.mxu1 %v3247_v42  ;;  %v1930_v42 = vld [vmem:[#allocation35 + $0x28] sm:$0xff] }
 0xb68   :  { %3252 = vmatprep.subr.bf16.mxu1 %v3251_v19  ;;  %v3298_v15 = vpack.c.bf16 %v1930_v42, %v1929_v13 }
 0xb6b   :  { %3254 = vmatpush3.bf16.msra.mxu1 %v3251_v19  ;;  %v1932_v19 = vld [vmem:[#allocation35 + $0x38] sm:$0xff] }
 0xb6c   :  { %3256 = vmatprep.subr.bf16.mxu1 %v3255_v22  ;;  %v3301_v20 = vpack.c.bf16 %v1932_v19, %v1931_v0 }
 0xb6f   :  { %3258 = vmatpush3.bf16.msra.mxu1 %v3255_v22 }
 0xb70   :  { %2879 = vmatprep.subr.bf16.mxu1 %v4015_v1 }
 0xc25   :  { %v1710_v52 = vpop.f32.mrb[28].mxu1 }
 0xc26   :  { %v1711_v53 = vadd.f32 %v1710_v52, %v1300_v43  ;;  %v2807_v54 = vpop.f32.mrb[29].mxu1  ;;  %v2030_v52 = vld [vmem:[%s4167_s6 + $0x48] sm:$0xff] }
 0xc27   :  { %v1713_v39 = vpop.f32.mrb[30].mxu1  ;;  %v2031_v54 = vld [vmem:[%s4167_s6 + $0x50] sm:$0xff] }
 0xc28   :  { %v1714_v55 = vadd.f32 %v1713_v39, %v1301_v41  ;;  %2841 = vmatprep.mubr.f32.mxu1 %v1711_v53  ;;  %v2808_v56 = vpop.f32.mrb[31].mxu1  ;;  %v3328_v53 = vpack.c.bf16 %v2030_v52, %v2029_v51  ;;  %v2032_v39 = vld [vmem:[%s4167_s6 + $0x58] sm:$0xff] }
 0xc2a   :  { %2842 = vmatmul.mubr.f32.vlgmr.msra.gmra.mrb[32].mxu1 %v1714_v55  ;;  %v3331_v55 = vpack.c.bf16 %v2032_v39, %v2031_v54 }
 0xc2b   :  { %2881 = vmatprep.mubr.msk.bf16.mxu1 %vm4016_vm0, %v4015_v1 }
 0xcfd   :  { %v2843_v43 = vpop.f32.mrb[32].mxu1 }
 0xcfe   :  { %v1795_v6 = vadd.f32 %v2843_v43, %v2193_v38  ;;  %v1789_v11 = vpop.f32.mrb[33].mxu1  ;;  %v2033_v43 = vld [vmem:[%s4167_s6 + $0x60] sm:$0xff] }
 0xcff   :  { %v1790_v17 = vadd.f32 %v2193_v38, %v1789_v11 }
 0xd00   :  { %v1799_v41 = vmax.f32 %v1795_v6, 0.0  ;;  %v2034_v6 = vld [vmem:[%s4167_s6 + $0x68] sm:$0xff] }
 0xd01   :  { %v1798_v36 = vmax.f32 %v1790_v17, 0.0  ;;  %v3334_v11 = vpack.c.bf16 %v2034_v6, %v2033_v43  ;;  %v2035_v17 = vld [vmem:[%s4167_s6 + $0x70] sm:$0xff] }
 0xd03   :  { %2876 = vmatprep.mubr.f32.mxu0 %v1798_v36  ;;  %v2036_v36 = vld [vmem:[%s4167_s6 + $0x78] sm:$0xff]  ;;  %s4018_s6 = smov [#allocation38]  }
 0xd04   :  { %2877 = vmatmul.mubr.f32.vlgmr.msra.gmra.mrb[18].mxu0 %v1799_v41  ;;  %v3337_v41 = vpack.c.bf16 %v2036_v36, %v2035_v17  ;;  %s2126_s23 = sshll.u32 %s4018_s6, 4  ;;  %s2127_s23 = int_to_ptr.vmem [resolvable:$true] %s2126_s23 }
 0xd05   :  { %2952 = vmatprep.mubr.msk.f32.mxu0 %vm4016_vm0, %v4015_v1  ;;  %3317 = vmatpush3.bf16.msra.mxu0 %v3316_v37  ;;  %s3911_s9 = scalar_lea.vmem %s2127_s23, 128  ;;  %p3916_p3 = scmp.lt.s32.totalorder %s2127_s23, %s2127_s23 }
 0xd06   :  { %3318 = vmatprep.subr.bf16.mxu0 %v4017_v59  ;;  %p3912_p2 = scmp.ne.s32.totalorder %s2127_s23, %s3911_s9  ;;  %p3917_p4 = scmp.lt.s32.totalorder %s3911_s9, %s3911_s9 }
 0xd08   :  { %p3918_p5 = por %p3917_p4, %p3916_p3 }
 0xd09   :  { %3320 = vmatpush3.bf16.msra.mxu0 %v3319_v45 }
 0xd0a   :  { %3321 = vmatprep.subr.bf16.mxu0 %v4017_v59  ;;  %p3919_p6 = pnand %p3918_p5, %p3912_p2 }
 0xd0d   :  { %3323 = vmatpush3.bf16.msra.mxu0 %v3322_v46 }
 0xd0e   :  { %3324 = vmatprep.subr.bf16.mxu0 %v4017_v59 }
 0xd11   :  { %3326 = vmatpush3.bf16.msra.mxu0 %v3325_v49 }
 0xd12   :  { %3327 = vmatprep.subr.bf16.mxu0 %v4017_v59 }
 0xd15   :  { %3329 = vmatpush3.bf16.msra.mxu0 %v3328_v53 }
 0xd16   :  { %3330 = vmatprep.subr.bf16.mxu0 %v4017_v59 }
 0xd19   :  { %3332 = vmatpush3.bf16.msra.mxu0 %v3331_v55 }
 0xd1a   :  { %3333 = vmatprep.subr.bf16.mxu0 %v4017_v59 }
 0xd1d   :  { %3335 = vmatpush3.bf16.msra.mxu0 %v3334_v11 }
 0xd1e   :  { %3336 = vmatprep.subr.bf16.mxu0 %v4017_v59 }
 0xd21   :  { %3338 = vmatpush3.bf16.msra.mxu0 %v3337_v41 }
 0xdd7   :  { %v2878_v9 = vpop.f32.mrb[18].mxu0 }
 0xdd8   :  { %v1878_v32 = vadd.f32 %v2878_v9, %v2194_v4  ;;  %v1872_v60 = vpop.f32.mrb[19].mxu0  ;;  %v2196_v9 = vld [vmem:[#allocation37] ss:$0 sm:$0xff] }
 0xdd9   :  { %v1873_v61 = vadd.f32 %v2194_v4, %v1872_v60 }
 0xdda   :  { %v1882_v62 = vmax.f32 %v1878_v32, 0.0 }
 0xddb   :  { %v1881_v63 = vmax.f32 %v1873_v61, 0.0 }
 0xddd   :  { %v1883_v5 = vpack.c.bf16 %v1882_v62, %v1881_v63  ;;  %v2197_v62 = vld [vmem:[%s4172_s3] ss:$0 sm:$0xff] }
 0xddf   :  { %2880 = vmatpush3.bf16.msra.mxu1 %v1883_v5 }
 0xde0   :  { %3291 = vmatprep.subr.bf16.mxu1 %v4017_v59 }
 0xde2   :  { %2882 = vmatmul.mubr.msk.bf16.vlgmr.msra.gmra.mrb[36].mxu1 %vm595_vm3, %v4422_v18  ;;  %v1933_v18 = vld [vmem:[#allocation35 + $0x40] sm:$0xff] }
 0xde3   :  { %3293 = vmatpush3.bf16.msra.mxu1 %v3292_v7  ;;  %2917 = vmatprep.mubr.msk.f32.mxu1 %vm4016_vm0, %v4015_v1  ;;  %v3304_v22 = vpack.c.bf16 %v1934_v21, %v1933_v18  ;;  %v1935_v1 = vld [vmem:[#allocation35 + $0x50] sm:$0xff] }
 0xde4   :  { %3294 = vmatprep.subr.bf16.mxu1 %v4017_v59  ;;  %v3307_v24 = vpack.c.bf16 %v1936_v23, %v1935_v1 }
 0xde7   :  { %3296 = vmatpush3.bf16.msra.mxu1 %v3295_v12 }
 0xde8   :  { %3297 = vmatprep.subr.bf16.mxu1 %v4017_v59 }
 0xdeb   :  { %3299 = vmatpush3.bf16.msra.mxu1 %v3298_v15 }
 0xdec   :  { %3300 = vmatprep.subr.bf16.mxu1 %v4017_v59 }
 0xdef   :  { %3302 = vmatpush3.bf16.msra.mxu1 %v3301_v20 }
 0xdf0   :  { %3303 = vmatprep.subr.bf16.mxu1 %v4017_v59 }
 0xdf3   :  { %3305 = vmatpush3.bf16.msra.mxu1 %v3304_v22 }
 0xdf4   :  { %3306 = vmatprep.subr.bf16.mxu1 %v4017_v59 }
 0xdf7   :  { %3308 = vmatpush3.bf16.msra.mxu1 %v3307_v24 }
 0xdf8   :  { %3309 = vmatprep.subr.bf16.mxu1 %v4017_v59 }
 0xdfb   :  { %3311 = vmatpush3.bf16.msra.mxu1 %v3310_v27 }
 0xdfc   :  { %3312 = vmatprep.subr.bf16.mxu1 %v4017_v59 }
 0xdff   :  { %3314 = vmatpush3.bf16.msra.mxu1 %v3313_v30 }
 0xeb5   :  { %v1918_v56 = vpop.f32.mrb[36].mxu1 }
 0xeb6   :  { %v1924_v16 = vmul.f32 %v1918_v56, %v4454_v31  ;;  %v2883_v57 = vpop.f32.mrb[37].mxu1 }
 0xeb7   :  { %v1921_v58 = vpop.f32.mrb[38].mxu1 }
 0xeb8   :  { %2918 = vmatmul.mubr.f32.vlgmr.msra.gmra.mrb[34].mxu1 %v1924_v16  ;;  %v2884_v38 = vpop.f32.mrb[39].mxu1 }
 0xf8b   :  { %v2007_v4 = vpop.f32.mrb[34].mxu1 }
 0xf8c   :  { %v2011_v32 = vadd.f32 %v2007_v4, %v4494_v50  ;;  %v2919_v31 = vpop.f32.mrb[35].mxu1 }
 0xf8e   :  { %v2019_v60 = vadd.f32 %v2196_v9, %v2011_v32 }
 0xf90   :  { %v2020_v61 = vmax.f32 %v2019_v60, 0.0 }
 0xf92   :  { %2953 = vmatmul.mubr.f32.vlgmr.msra.gmra.mrb[20].mxu0 %v2020_v61 }
0x1065   :  { %v2110_v63 = vpop.f32.mrb[20].mxu0 }
0x1066   :  { %v2111_v2 = vadd.f32 %v2197_v62, %v2110_v63  ;;  %v2954_v3 = vpop.f32.mrb[21].mxu0 }
0x1068   :  { %v2114_v5 = vsub.f32 0.0, %v2111_v2 }
0x106a   :  { %v2115_v7 = vmul.f32 1.442695, %v2114_v5 }
0x106c   :  { %3401 = vpow2.f32 %v2115_v7 }
0x1076   :  { %v3402_v59 = vpop.eup %3401 }
0x1077   :  { %v2117_v8 = vadd.f32 1.0, %v3402_v59 }
0x1079   :  { %3403 = vrcp.f32 %v2117_v8 }
0x1083   :  { %v3404_v10 = vpop.eup %3403 }
0x1084   :  { %2119 = vst [vmem:[#allocation38] sm:$0xff] %v3404_v10 }
0x1085   :  { %3922 = shalt.err (!%p3919_p6)
}
0x1086   :  { %s3923_s3 = scalar_lea.hbm %s4177_s24, 128 }
0x1087   :  { %p3924_p7 = scmp.ne.s32.totalorder %s4177_s24, %s3923_s3  ;;  %p3927_p8 = scmp.lt.u32.totalorder %s3923_s3, %s4177_s24 }
0x1089   :  { %p3929_p9 = pnand %p3927_p8, %p3924_p7 }
0x108b   :  { %3932 = shalt.err (!%p3929_p9)
}
0x108c   :  { %2129 = dma.vmem_to_hbm [thread:$0]  %s2127_s23, 128, %s4177_s24, [#allocation4]  }
0x108d   :  { %3957 = dma.done.wait [#allocation4], 128  }
0x108e   :  { %3958 = vsyncadd [#allocation4], 4294967168 }
0x108f   :  { %2133 = vsyncpa [#allocation3], 1 }
0x1090   :  { %2134 = vsyncpa [#allocation6], 1 }
0x1091   :  { %2135 = vsyncpa [#allocation9], 1 }
0x1092   :  { %2136 = vsyncpa [#allocation12], 1 }
0x1093   :  { %2137 = vsyncpa [#allocation15], 1 }
0x1094   :  { %2138 = vsyncpa [#allocation18], 1 }
0x1095   :  { %2139 = vsyncpa [#allocation21], 1 }
0x1096   :  { %2140 = vsyncpa [#allocation24], 1 }
0x1097   :  { %2141 = vsyncpa [#allocation27], 1 }
0x1098   :  { %2142 = vsyncpa [#allocation30], 1 }
0x1099   :  { %2143 = vsyncpa [#allocation33], 1 }
0x109a   :  { %2144 = vsyncpa [#allocation36], 1 }
0x109b   :  { %2145 = vsyncpa [#allocation4], 1 }

</bundles_post_ra>
